<compile_context>
chip_gen: v5e
topology: v5e:2x2
jax: 0.10.0
libtpu: 0.0.40
codegen_flags: <defaults>
</compile_context>

<pallas_src>
import functools

import jax
import jax.numpy as jnp
from jax.experimental import pallas as pl
from jax.experimental.pallas import tpu as pltpu


def _round_up(a, b):
    return (a + b - 1) // b * b


def _gated_conv_kernel(x_ref, w_ref, b_ref, o_ref, gbuf_ref, *,
                       cout_p, kh, kw, dil, stride, wp, ow, activation):
    """Fused gated conv for one image.

    x_ref   : (1, Cin, XLEN)          bf16, zero-padded image, spatial flattened (Hp*Wp + tail)
    w_ref   : (KH*KW, 2*Cout_p, Cin)  bf16, per-tap fused [Wh; Wg] weights
    b_ref   : (2*Cout_p, 1)           f32,  fused [bh; bg] bias
    o_ref   : (1, Cout_p, OH, OW)     f32,  NCHW output block
    gbuf_ref: (Cout_p, OH*Wp)         f32 scratch holding the padded-width gated result
    """
    oh = o_ref.shape[2]
    m_len = gbuf_ref.shape[1]                      # OH * Wp  (padded-width output positions)

    # Tap loop: every tap is a contiguous (strided if stride>1) slice of the flattened image,
    # one small MXU matmul per tap, f32 accumulation across taps.
    acc = None
    for t in range(kh * kw):
        i, j = divmod(t, kw)
        start = i * dil * wp + j * dil             # static offset
        if stride == 1:
            xs = x_ref[0, :, start:start + m_len]                      # (Cin, OH*Wp) bf16
        else:
            xs = x_ref[0, :, pl.ds(start, m_len, stride)]              # strided lane load
        contrib = jnp.dot(w_ref[t], xs, preferred_element_type=jnp.float32)
        acc = contrib if acc is None else acc + contrib                # (2*Cout_p, OH*Wp) f32

    hg = acc + b_ref[...]
    h = hg[:cout_p, :]
    g = hg[cout_p:, :]
    if activation is not None:                      # module default: activation is None
        h = activation(h)
    gate = 0.5 * jnp.tanh(0.5 * g) + 0.5            # sigmoid via EUP tanh (free co-issue slot)
    gbuf_ref[...] = h * gate

    # Repack padded-width rows (Wp columns, first OW valid) into the NCHW output block.
    # Stays in VMEM -- no extra HBM pass, no wrapper transpose/slice.
    for r in range(oh):
        o_ref[0, :, r, :] = gbuf_ref[:, r * wp: r * wp + ow]


@functools.partial(jax.jit,
                   static_argnames=("stride", "padding", "dilation", "activation"))
def gated_conv2d(x, wh, bh, wg, bg, *, stride=1, padding=0, dilation=1, activation=None):
    """Forward pass of GatedConv2d. x: NCHW f32, wh/wg: OIHW f32, bh/bg: (Cout,) f32."""
    n, cin, h, w = x.shape
    cout, _, kh, kw = wh.shape
    oh = (h + 2 * padding - dilation * (kh - 1) - 1) // stride + 1
    ow = (w + 2 * padding - dilation * (kw - 1) - 1) // stride + 1
    hp, wp = h + 2 * padding, w + 2 * padding
    cout_p = _round_up(cout, 8)                 # keep the h/g sublane split vreg-aligned

    # Padded-width formulation: evaluate the conv at all (OH, Wp) positions so every tap is a
    # plain slice of the flattened padded image; the extra Wp-OW columns per row are discarded
    # inside the kernel during the NCHW repack.
    m_len = oh * wp
    off_max = (kh - 1) * dilation * wp + (kw - 1) * dilation
    xlen = _round_up(max(hp * wp, (m_len - 1) * stride + off_max + 1), 128)

    # Zero-pad spatially, flatten spatial, pad a small tail, cast to bf16 (halves the dominant
    # HBM read; accumulation stays f32).
    xp = jnp.pad(x, ((0, 0), (0, 0), (padding, padding), (padding, padding)))
    xf = xp.reshape(n, cin, hp * wp)
    xf = jnp.pad(xf, ((0, 0), (0, 0), (0, xlen - hp * wp))).astype(jnp.bfloat16)

    # Fuse both convs' parameters: per-tap (2*Cout_p, Cin) weight slabs, [h; g] stacked on the
    # sublane axis (Cout padded to a multiple of 8 so the split stays tile-aligned).
    def pad_oc(a):
        return jnp.pad(a, ((0, cout_p - cout),) + ((0, 0),) * (a.ndim - 1))

    wf = jnp.concatenate([pad_oc(wh), pad_oc(wg)], axis=0)                  # (2*Cout_p, Cin, KH, KW)
    w_taps = (wf.transpose(2, 3, 0, 1)
                .reshape(kh * kw, 2 * cout_p, cin)
                .astype(jnp.bfloat16))                                      # (KH*KW, 2*Cout_p, Cin)
    b_f = jnp.concatenate([pad_oc(bh), pad_oc(bg)]).reshape(2 * cout_p, 1).astype(jnp.float32)

    kernel = functools.partial(
        _gated_conv_kernel, cout_p=cout_p, kh=kh, kw=kw, dil=dilation,
        stride=stride, wp=wp, ow=ow, activation=activation)

    out = pl.pallas_call(
        kernel,
        out_shape=jax.ShapeDtypeStruct((n, cout_p, oh, ow), jnp.float32),
        grid_spec=pltpu.PrefetchScalarGridSpec(
            num_scalar_prefetch=0,
            grid=(n,),                                                      # one fat step / image
            in_specs=[
                pl.BlockSpec((1, cin, xlen), lambda b: (b, 0, 0)),          # whole padded image
                pl.BlockSpec((kh * kw, 2 * cout_p, cin), lambda b: (0, 0, 0)),  # resident weights
                pl.BlockSpec((2 * cout_p, 1), lambda b: (0, 0)),            # resident bias
            ],
            out_specs=pl.BlockSpec((1, cout_p, oh, ow), lambda b: (b, 0, 0, 0)),  # NCHW block
            scratch_shapes=[pltpu.VMEM((cout_p, m_len), jnp.float32)],
        ),
        compiler_params=pltpu.CompilerParams(
            # Batch axis kept sequential ("arbitrary"): for this tiny workload a single core
            # with 2 pipelined steps beats splitting 1 step per v7x core; flip to "parallel"
            # for large batches.
            dimension_semantics=("arbitrary",),
            vmem_limit_bytes=32 * 1024 * 1024,   # safe on v5e/v6e (128 MiB) and v7x (64 MiB)
        ),
    )(xf, w_taps, b_f)

    return out if cout_p == cout else out[:, :cout]


def _ref_gated_conv2d(x, wh, bh, wg, bg, *, stride, padding, dilation):
    def conv(w, b):
        y = jax.lax.conv_general_dilated(
            x, w, window_strides=(stride, stride),
            padding=[(padding, padding), (padding, padding)],
            rhs_dilation=(dilation, dilation),
            dimension_numbers=("NCHW", "OIHW", "NCHW"))
        return y + b[None, :, None, None]
    return conv(wh, bh) * jax.nn.sigmoid(conv(wg, bg))


if __name__ == "__main__":
    # Module config (PyTorch): GatedConv2d(input_channels=4, output_channels=8,
    #                                      kernel_size=3, stride=1, padding=1, dilation=1)
    N, CIN, H, W = 2, 4, 16, 16
    COUT, KS, STRIDE, PAD, DIL = 8, 3, 1, 1, 1

    key = jax.random.PRNGKey(0)
    kx, kwh, kbh, kwg, kbg = jax.random.split(key, 5)
    x = jax.random.normal(kx, (N, CIN, H, W), dtype=jnp.float32)
    # Deterministic synthetic parameters (Conv2d-shaped).
    wh = 0.1 * jax.random.normal(kwh, (COUT, CIN, KS, KS), dtype=jnp.float32)
    bh = 0.1 * jax.random.normal(kbh, (COUT,), dtype=jnp.float32)
    wg = 0.1 * jax.random.normal(kwg, (COUT, CIN, KS, KS), dtype=jnp.float32)
    bg = 0.1 * jax.random.normal(kbg, (COUT,), dtype=jnp.float32)

    out = gated_conv2d(x, wh, bh, wg, bg, stride=STRIDE, padding=PAD, dilation=DIL)
    out = jax.block_until_ready(out)

    ref = _ref_gated_conv2d(x, wh, bh, wg, bg, stride=STRIDE, padding=PAD, dilation=DIL)
    assert out.shape == (N, COUT, H, W), out.shape
    # bf16 matmul operands (f32 accumulation) -> compare with a bf16-appropriate tolerance.
    err = float(jnp.max(jnp.abs(out - ref)))
    assert err < 3e-2, f"mismatch vs reference conv: max|err|={err}"
    print("KERNEL_OK")
</pallas_src>

<mosaic_0001>
module attributes {stable_mosaic.version = 11 : i64} {
  func.func @_gated_conv_kernel(%arg0: i32, %arg1: memref<1x4x384xbf16, #tpu.memory_space<vmem>>, %arg2: memref<9x16x4xbf16, #tpu.memory_space<vmem>>, %arg3: memref<16x1xf32, #tpu.memory_space<vmem>>, %arg4: memref<1x8x16x16xf32, #tpu.memory_space<vmem>>, %arg5: memref<8x288xf32, #tpu.memory_space<vmem>>) attributes {dimension_semantics = [#tpu.dimension_semantics<arbitrary>], iteration_bounds = array<i64: 2>, scalar_prefetch = 0 : i64, scratch_operands = 1 : i64, tpu.core_type = #tpu.core_type<tc>, window_params = [{transform_indices = @transform_0, window_bounds = array<i64: 1, 4, 384>}, {pipeline_mode = #tpu.pipeline_mode<synchronous>, transform_indices = @transform_1, window_bounds = array<i64: 9, 16, 4>}, {pipeline_mode = #tpu.pipeline_mode<synchronous>, transform_indices = @transform_2, window_bounds = array<i64: 16, 1>}, {transform_indices = @transform_3, window_bounds = array<i64: 1, 8, 16, 16>}]} {
    %c0 = arith.constant 0 : index
    %c0_0 = arith.constant 0 : index
    %c0_1 = arith.constant 0 : index
    %0 = vector.load %arg1[%c0, %c0_0, %c0_1] : memref<1x4x384xbf16, #tpu.memory_space<vmem>>, vector<1x4x288xbf16>
    %1 = vector.shape_cast %0 : vector<1x4x288xbf16> to vector<4x288xbf16>
    %c0_2 = arith.constant 0 : index
    %c0_3 = arith.constant 0 : index
    %c0_4 = arith.constant 0 : index
    %2 = vector.load %arg2[%c0_2, %c0_3, %c0_4] : memref<9x16x4xbf16, #tpu.memory_space<vmem>>, vector<1x16x4xbf16>
    %3 = vector.shape_cast %2 : vector<1x16x4xbf16> to vector<16x4xbf16>
    %cst = arith.constant dense<0.000000e+00> : vector<16x288xf32>
    %4 = tpu.matmul %3, %1, %cst {dimension_numbers = #tpu.dot_dimension_numbers<[1], [0], [0], [1], [0, 0, 1, 1], [], []>} : vector<16x4xbf16>, vector<4x288xbf16>, vector<16x288xf32> -> vector<16x288xf32>
    %c0_5 = arith.constant 0 : index
    %c0_6 = arith.constant 0 : index
    %c1 = arith.constant 1 : index
    %5 = vector.load %arg1[%c0_5, %c0_6, %c1] : memref<1x4x384xbf16, #tpu.memory_space<vmem>>, vector<1x4x288xbf16>
    %6 = vector.shape_cast %5 : vector<1x4x288xbf16> to vector<4x288xbf16>
    %c1_7 = arith.constant 1 : index
    %c0_8 = arith.constant 0 : index
    %c0_9 = arith.constant 0 : index
    %7 = vector.load %arg2[%c1_7, %c0_8, %c0_9] : memref<9x16x4xbf16, #tpu.memory_space<vmem>>, vector<1x16x4xbf16>
    %8 = vector.shape_cast %7 : vector<1x16x4xbf16> to vector<16x4xbf16>
    %cst_10 = arith.constant dense<0.000000e+00> : vector<16x288xf32>
    %9 = tpu.matmul %8, %6, %cst_10 {dimension_numbers = #tpu.dot_dimension_numbers<[1], [0], [0], [1], [0, 0, 1, 1], [], []>} : vector<16x4xbf16>, vector<4x288xbf16>, vector<16x288xf32> -> vector<16x288xf32>
    %10 = arith.addf %4, %9 : vector<16x288xf32>
    %c0_11 = arith.constant 0 : index
    %c0_12 = arith.constant 0 : index
    %c2 = arith.constant 2 : index
    %11 = vector.load %arg1[%c0_11, %c0_12, %c2] : memref<1x4x384xbf16, #tpu.memory_space<vmem>>, vector<1x4x288xbf16>
    %12 = vector.shape_cast %11 : vector<1x4x288xbf16> to vector<4x288xbf16>
    %c2_13 = arith.constant 2 : index
    %c0_14 = arith.constant 0 : index
    %c0_15 = arith.constant 0 : index
    %13 = vector.load %arg2[%c2_13, %c0_14, %c0_15] : memref<9x16x4xbf16, #tpu.memory_space<vmem>>, vector<1x16x4xbf16>
    %14 = vector.shape_cast %13 : vector<1x16x4xbf16> to vector<16x4xbf16>
    %cst_16 = arith.constant dense<0.000000e+00> : vector<16x288xf32>
    %15 = tpu.matmul %14, %12, %cst_16 {dimension_numbers = #tpu.dot_dimension_numbers<[1], [0], [0], [1], [0, 0, 1, 1], [], []>} : vector<16x4xbf16>, vector<4x288xbf16>, vector<16x288xf32> -> vector<16x288xf32>
    %16 = arith.addf %10, %15 : vector<16x288xf32>
    %c0_17 = arith.constant 0 : index
    %c0_18 = arith.constant 0 : index
    %c18 = arith.constant 18 : index
    %17 = vector.load %arg1[%c0_17, %c0_18, %c18] : memref<1x4x384xbf16, #tpu.memory_space<vmem>>, vector<1x4x288xbf16>
    %18 = vector.shape_cast %17 : vector<1x4x288xbf16> to vector<4x288xbf16>
    %c3 = arith.constant 3 : index
    %c0_19 = arith.constant 0 : index
    %c0_20 = arith.constant 0 : index
    %19 = vector.load %arg2[%c3, %c0_19, %c0_20] : memref<9x16x4xbf16, #tpu.memory_space<vmem>>, vector<1x16x4xbf16>
    %20 = vector.shape_cast %19 : vector<1x16x4xbf16> to vector<16x4xbf16>
    %cst_21 = arith.constant dense<0.000000e+00> : vector<16x288xf32>
    %21 = tpu.matmul %20, %18, %cst_21 {dimension_numbers = #tpu.dot_dimension_numbers<[1], [0], [0], [1], [0, 0, 1, 1], [], []>} : vector<16x4xbf16>, vector<4x288xbf16>, vector<16x288xf32> -> vector<16x288xf32>
    %22 = arith.addf %16, %21 : vector<16x288xf32>
    %c0_22 = arith.constant 0 : index
    %c0_23 = arith.constant 0 : index
    %c19 = arith.constant 19 : index
    %23 = vector.load %arg1[%c0_22, %c0_23, %c19] : memref<1x4x384xbf16, #tpu.memory_space<vmem>>, vector<1x4x288xbf16>
    %24 = vector.shape_cast %23 : vector<1x4x288xbf16> to vector<4x288xbf16>
    %c4 = arith.constant 4 : index
    %c0_24 = arith.constant 0 : index
    %c0_25 = arith.constant 0 : index
    %25 = vector.load %arg2[%c4, %c0_24, %c0_25] : memref<9x16x4xbf16, #tpu.memory_space<vmem>>, vector<1x16x4xbf16>
    %26 = vector.shape_cast %25 : vector<1x16x4xbf16> to vector<16x4xbf16>
    %cst_26 = arith.constant dense<0.000000e+00> : vector<16x288xf32>
    %27 = tpu.matmul %26, %24, %cst_26 {dimension_numbers = #tpu.dot_dimension_numbers<[1], [0], [0], [1], [0, 0, 1, 1], [], []>} : vector<16x4xbf16>, vector<4x288xbf16>, vector<16x288xf32> -> vector<16x288xf32>
    %28 = arith.addf %22, %27 : vector<16x288xf32>
    %c0_27 = arith.constant 0 : index
    %c0_28 = arith.constant 0 : index
    %c20 = arith.constant 20 : index
    %29 = vector.load %arg1[%c0_27, %c0_28, %c20] : memref<1x4x384xbf16, #tpu.memory_space<vmem>>, vector<1x4x288xbf16>
    %30 = vector.shape_cast %29 : vector<1x4x288xbf16> to vector<4x288xbf16>
    %c5 = arith.constant 5 : index
    %c0_29 = arith.constant 0 : index
    %c0_30 = arith.constant 0 : index
    %31 = vector.load %arg2[%c5, %c0_29, %c0_30] : memref<9x16x4xbf16, #tpu.memory_space<vmem>>, vector<1x16x4xbf16>
    %32 = vector.shape_cast %31 : vector<1x16x4xbf16> to vector<16x4xbf16>
    %cst_31 = arith.constant dense<0.000000e+00> : vector<16x288xf32>
    %33 = tpu.matmul %32, %30, %cst_31 {dimension_numbers = #tpu.dot_dimension_numbers<[1], [0], [0], [1], [0, 0, 1, 1], [], []>} : vector<16x4xbf16>, vector<4x288xbf16>, vector<16x288xf32> -> vector<16x288xf32>
    %34 = arith.addf %28, %33 : vector<16x288xf32>
    %c0_32 = arith.constant 0 : index
    %c0_33 = arith.constant 0 : index
    %c36 = arith.constant 36 : index
    %35 = vector.load %arg1[%c0_32, %c0_33, %c36] : memref<1x4x384xbf16, #tpu.memory_space<vmem>>, vector<1x4x288xbf16>
    %36 = vector.shape_cast %35 : vector<1x4x288xbf16> to vector<4x288xbf16>
    %c6 = arith.constant 6 : index
    %c0_34 = arith.constant 0 : index
    %c0_35 = arith.constant 0 : index
    %37 = vector.load %arg2[%c6, %c0_34, %c0_35] : memref<9x16x4xbf16, #tpu.memory_space<vmem>>, vector<1x16x4xbf16>
    %38 = vector.shape_cast %37 : vector<1x16x4xbf16> to vector<16x4xbf16>
    %cst_36 = arith.constant dense<0.000000e+00> : vector<16x288xf32>
    %39 = tpu.matmul %38, %36, %cst_36 {dimension_numbers = #tpu.dot_dimension_numbers<[1], [0], [0], [1], [0, 0, 1, 1], [], []>} : vector<16x4xbf16>, vector<4x288xbf16>, vector<16x288xf32> -> vector<16x288xf32>
    %40 = arith.addf %34, %39 : vector<16x288xf32>
    %c0_37 = arith.constant 0 : index
    %c0_38 = arith.constant 0 : index
    %c37 = arith.constant 37 : index
    %41 = vector.load %arg1[%c0_37, %c0_38, %c37] : memref<1x4x384xbf16, #tpu.memory_space<vmem>>, vector<1x4x288xbf16>
    %42 = vector.shape_cast %41 : vector<1x4x288xbf16> to vector<4x288xbf16>
    %c7 = arith.constant 7 : index
    %c0_39 = arith.constant 0 : index
    %c0_40 = arith.constant 0 : index
    %43 = vector.load %arg2[%c7, %c0_39, %c0_40] : memref<9x16x4xbf16, #tpu.memory_space<vmem>>, vector<1x16x4xbf16>
    %44 = vector.shape_cast %43 : vector<1x16x4xbf16> to vector<16x4xbf16>
    %cst_41 = arith.constant dense<0.000000e+00> : vector<16x288xf32>
    %45 = tpu.matmul %44, %42, %cst_41 {dimension_numbers = #tpu.dot_dimension_numbers<[1], [0], [0], [1], [0, 0, 1, 1], [], []>} : vector<16x4xbf16>, vector<4x288xbf16>, vector<16x288xf32> -> vector<16x288xf32>
    %46 = arith.addf %40, %45 : vector<16x288xf32>
    %c0_42 = arith.constant 0 : index
    %c0_43 = arith.constant 0 : index
    %c38 = arith.constant 38 : index
    %47 = vector.load %arg1[%c0_42, %c0_43, %c38] : memref<1x4x384xbf16, #tpu.memory_space<vmem>>, vector<1x4x288xbf16>
    %48 = vector.shape_cast %47 : vector<1x4x288xbf16> to vector<4x288xbf16>
    %c8 = arith.constant 8 : index
    %c0_44 = arith.constant 0 : index
    %c0_45 = arith.constant 0 : index
    %49 = vector.load %arg2[%c8, %c0_44, %c0_45] : memref<9x16x4xbf16, #tpu.memory_space<vmem>>, vector<1x16x4xbf16>
    %50 = vector.shape_cast %49 : vector<1x16x4xbf16> to vector<16x4xbf16>
    %cst_46 = arith.constant dense<0.000000e+00> : vector<16x288xf32>
    %51 = tpu.matmul %50, %48, %cst_46 {dimension_numbers = #tpu.dot_dimension_numbers<[1], [0], [0], [1], [0, 0, 1, 1], [], []>} : vector<16x4xbf16>, vector<4x288xbf16>, vector<16x288xf32> -> vector<16x288xf32>
    %52 = arith.addf %46, %51 : vector<16x288xf32>
    %c0_47 = arith.constant 0 : index
    %c0_48 = arith.constant 0 : index
    %53 = vector.load %arg3[%c0_47, %c0_48] : memref<16x1xf32, #tpu.memory_space<vmem>>, vector<16x1xf32>
    %54 = vector.broadcast %53 : vector<16x1xf32> to vector<16x288xf32>
    %55 = arith.addf %52, %54 : vector<16x288xf32>
    %56 = vector.extract_strided_slice %55 {offsets = [0, 0], sizes = [8, 288], strides = [1, 1]} : vector<16x288xf32> to vector<8x288xf32>
    %57 = vector.extract_strided_slice %55 {offsets = [8, 0], sizes = [8, 288], strides = [1, 1]} : vector<16x288xf32> to vector<8x288xf32>
    %cst_49 = arith.constant 5.000000e-01 : f32
    %58 = vector.broadcast %cst_49 : f32 to vector<8x288xf32>
    %59 = arith.mulf %58, %57 : vector<8x288xf32>
    %60 = math.tanh %59 : vector<8x288xf32>
    %cst_50 = arith.constant 5.000000e-01 : f32
    %61 = vector.broadcast %cst_50 : f32 to vector<8x288xf32>
    %62 = arith.mulf %61, %60 : vector<8x288xf32>
    %cst_51 = arith.constant 5.000000e-01 : f32
    %63 = vector.broadcast %cst_51 : f32 to vector<8x288xf32>
    %64 = arith.addf %62, %63 : vector<8x288xf32>
    %65 = arith.mulf %56, %64 : vector<8x288xf32>
    %c0_52 = arith.constant 0 : index
    %c0_53 = arith.constant 0 : index
    %66 = vector.load %arg5[%c0_52, %c0_53] : memref<8x288xf32, #tpu.memory_space<vmem>>, vector<8x288xf32>
    tpu.vector_store %arg5[%c0_52, %c0_53], %65 {strides = array<i32>} : memref<8x288xf32, #tpu.memory_space<vmem>>, vector<8x288xf32>,
    %c0_54 = arith.constant 0 : index
    %c0_55 = arith.constant 0 : index
    %67 = vector.load %arg5[%c0_54, %c0_55] : memref<8x288xf32, #tpu.memory_space<vmem>>, vector<8x16xf32>
    %c0_56 = arith.constant 0 : index
    %c0_57 = arith.constant 0 : index
    %c0_58 = arith.constant 0 : index
    %c0_59 = arith.constant 0 : index
    %68 = vector.load %arg4[%c0_56, %c0_57, %c0_58, %c0_59] : memref<1x8x16x16xf32, #tpu.memory_space<vmem>>, vector<1x8x1x16xf32>
    %69 = vector.shape_cast %68 : vector<1x8x1x16xf32> to vector<8x16xf32>
    %70 = vector.shape_cast %67 : vector<8x16xf32> to vector<1x8x1x16xf32>
    tpu.vector_store %arg4[%c0_56, %c0_57, %c0_58, %c0_59], %70 {strides = array<i32>} : memref<1x8x16x16xf32, #tpu.memory_space<vmem>>, vector<1x8x1x16xf32>,
    %c0_60 = arith.constant 0 : index
    %c18_61 = arith.constant 18 : index
    %71 = vector.load %arg5[%c0_60, %c18_61] : memref<8x288xf32, #tpu.memory_space<vmem>>, vector<8x16xf32>
    %c0_62 = arith.constant 0 : index
    %c0_63 = arith.constant 0 : index
    %c1_64 = arith.constant 1 : index
    %c0_65 = arith.constant 0 : index
    %72 = vector.load %arg4[%c0_62, %c0_63, %c1_64, %c0_65] : memref<1x8x16x16xf32, #tpu.memory_space<vmem>>, vector<1x8x1x16xf32>
    %73 = vector.shape_cast %72 : vector<1x8x1x16xf32> to vector<8x16xf32>
    %74 = vector.shape_cast %71 : vector<8x16xf32> to vector<1x8x1x16xf32>
    tpu.vector_store %arg4[%c0_62, %c0_63, %c1_64, %c0_65], %74 {strides = array<i32>} : memref<1x8x16x16xf32, #tpu.memory_space<vmem>>, vector<1x8x1x16xf32>,
    %c0_66 = arith.constant 0 : index
    %c36_67 = arith.constant 36 : index
    %75 = vector.load %arg5[%c0_66, %c36_67] : memref<8x288xf32, #tpu.memory_space<vmem>>, vector<8x16xf32>
    %c0_68 = arith.constant 0 : index
    %c0_69 = arith.constant 0 : index
    %c2_70 = arith.constant 2 : index
    %c0_71 = arith.constant 0 : index
    %76 = vector.load %arg4[%c0_68, %c0_69, %c2_70, %c0_71] : memref<1x8x16x16xf32, #tpu.memory_space<vmem>>, vector<1x8x1x16xf32>
    %77 = vector.shape_cast %76 : vector<1x8x1x16xf32> to vector<8x16xf32>
    %78 = vector.shape_cast %75 : vector<8x16xf32> to vector<1x8x1x16xf32>
    tpu.vector_store %arg4[%c0_68, %c0_69, %c2_70, %c0_71], %78 {strides = array<i32>} : memref<1x8x16x16xf32, #tpu.memory_space<vmem>>, vector<1x8x1x16xf32>,
    %c0_72 = arith.constant 0 : index
    %c54 = arith.constant 54 : index
    %79 = vector.load %arg5[%c0_72, %c54] : memref<8x288xf32, #tpu.memory_space<vmem>>, vector<8x16xf32>
    %c0_73 = arith.constant 0 : index
    %c0_74 = arith.constant 0 : index
    %c3_75 = arith.constant 3 : index
    %c0_76 = arith.constant 0 : index
    %80 = vector.load %arg4[%c0_73, %c0_74, %c3_75, %c0_76] : memref<1x8x16x16xf32, #tpu.memory_space<vmem>>, vector<1x8x1x16xf32>
    %81 = vector.shape_cast %80 : vector<1x8x1x16xf32> to vector<8x16xf32>
    %82 = vector.shape_cast %79 : vector<8x16xf32> to vector<1x8x1x16xf32>
    tpu.vector_store %arg4[%c0_73, %c0_74, %c3_75, %c0_76], %82 {strides = array<i32>} : memref<1x8x16x16xf32, #tpu.memory_space<vmem>>, vector<1x8x1x16xf32>,
    %c0_77 = arith.constant 0 : index
    %c72 = arith.constant 72 : index
    %83 = vector.load %arg5[%c0_77, %c72] : memref<8x288xf32, #tpu.memory_space<vmem>>, vector<8x16xf32>
    %c0_78 = arith.constant 0 : index
    %c0_79 = arith.constant 0 : index
    %c4_80 = arith.constant 4 : index
    %c0_81 = arith.constant 0 : index
    %84 = vector.load %arg4[%c0_78, %c0_79, %c4_80, %c0_81] : memref<1x8x16x16xf32, #tpu.memory_space<vmem>>, vector<1x8x1x16xf32>
    %85 = vector.shape_cast %84 : vector<1x8x1x16xf32> to vector<8x16xf32>
    %86 = vector.shape_cast %83 : vector<8x16xf32> to vector<1x8x1x16xf32>
    tpu.vector_store %arg4[%c0_78, %c0_79, %c4_80, %c0_81], %86 {strides = array<i32>} : memref<1x8x16x16xf32, #tpu.memory_space<vmem>>, vector<1x8x1x16xf32>,
    %c0_82 = arith.constant 0 : index
    %c90 = arith.constant 90 : index
    %87 = vector.load %arg5[%c0_82, %c90] : memref<8x288xf32, #tpu.memory_space<vmem>>, vector<8x16xf32>
    %c0_83 = arith.constant 0 : index
    %c0_84 = arith.constant 0 : index
    %c5_85 = arith.constant 5 : index
    %c0_86 = arith.constant 0 : index
    %88 = vector.load %arg4[%c0_83, %c0_84, %c5_85, %c0_86] : memref<1x8x16x16xf32, #tpu.memory_space<vmem>>, vector<1x8x1x16xf32>
    %89 = vector.shape_cast %88 : vector<1x8x1x16xf32> to vector<8x16xf32>
    %90 = vector.shape_cast %87 : vector<8x16xf32> to vector<1x8x1x16xf32>
    tpu.vector_store %arg4[%c0_83, %c0_84, %c5_85, %c0_86], %90 {strides = array<i32>} : memref<1x8x16x16xf32, #tpu.memory_space<vmem>>, vector<1x8x1x16xf32>,
    %c0_87 = arith.constant 0 : index
    %c108 = arith.constant 108 : index
    %91 = vector.load %arg5[%c0_87, %c108] : memref<8x288xf32, #tpu.memory_space<vmem>>, vector<8x16xf32>
    %c0_88 = arith.constant 0 : index
    %c0_89 = arith.constant 0 : index
    %c6_90 = arith.constant 6 : index
    %c0_91 = arith.constant 0 : index
    %92 = vector.load %arg4[%c0_88, %c0_89, %c6_90, %c0_91] : memref<1x8x16x16xf32, #tpu.memory_space<vmem>>, vector<1x8x1x16xf32>
    %93 = vector.shape_cast %92 : vector<1x8x1x16xf32> to vector<8x16xf32>
    %94 = vector.shape_cast %91 : vector<8x16xf32> to vector<1x8x1x16xf32>
    tpu.vector_store %arg4[%c0_88, %c0_89, %c6_90, %c0_91], %94 {strides = array<i32>} : memref<1x8x16x16xf32, #tpu.memory_space<vmem>>, vector<1x8x1x16xf32>,
    %c0_92 = arith.constant 0 : index
    %c126 = arith.constant 126 : index
    %95 = vector.load %arg5[%c0_92, %c126] : memref<8x288xf32, #tpu.memory_space<vmem>>, vector<8x16xf32>
    %c0_93 = arith.constant 0 : index
    %c0_94 = arith.constant 0 : index
    %c7_95 = arith.constant 7 : index
    %c0_96 = arith.constant 0 : index
    %96 = vector.load %arg4[%c0_93, %c0_94, %c7_95, %c0_96] : memref<1x8x16x16xf32, #tpu.memory_space<vmem>>, vector<1x8x1x16xf32>
    %97 = vector.shape_cast %96 : vector<1x8x1x16xf32> to vector<8x16xf32>
    %98 = vector.shape_cast %95 : vector<8x16xf32> to vector<1x8x1x16xf32>
    tpu.vector_store %arg4[%c0_93, %c0_94, %c7_95, %c0_96], %98 {strides = array<i32>} : memref<1x8x16x16xf32, #tpu.memory_space<vmem>>, vector<1x8x1x16xf32>,
    %c0_97 = arith.constant 0 : index
    %c144 = arith.constant 144 : index
    %99 = vector.load %arg5[%c0_97, %c144] : memref<8x288xf32, #tpu.memory_space<vmem>>, vector<8x16xf32>
    %c0_98 = arith.constant 0 : index
    %c0_99 = arith.constant 0 : index
    %c8_100 = arith.constant 8 : index
    %c0_101 = arith.constant 0 : index
    %100 = vector.load %arg4[%c0_98, %c0_99, %c8_100, %c0_101] : memref<1x8x16x16xf32, #tpu.memory_space<vmem>>, vector<1x8x1x16xf32>
    %101 = vector.shape_cast %100 : vector<1x8x1x16xf32> to vector<8x16xf32>
    %102 = vector.shape_cast %99 : vector<8x16xf32> to vector<1x8x1x16xf32>
    tpu.vector_store %arg4[%c0_98, %c0_99, %c8_100, %c0_101], %102 {strides = array<i32>} : memref<1x8x16x16xf32, #tpu.memory_space<vmem>>, vector<1x8x1x16xf32>,
    %c0_102 = arith.constant 0 : index
    %c162 = arith.constant 162 : index
    %103 = vector.load %arg5[%c0_102, %c162] : memref<8x288xf32, #tpu.memory_space<vmem>>, vector<8x16xf32>
    %c0_103 = arith.constant 0 : index
    %c0_104 = arith.constant 0 : index
    %c9 = arith.constant 9 : index
    %c0_105 = arith.constant 0 : index
    %104 = vector.load %arg4[%c0_103, %c0_104, %c9, %c0_105] : memref<1x8x16x16xf32, #tpu.memory_space<vmem>>, vector<1x8x1x16xf32>
    %105 = vector.shape_cast %104 : vector<1x8x1x16xf32> to vector<8x16xf32>
    %106 = vector.shape_cast %103 : vector<8x16xf32> to vector<1x8x1x16xf32>
    tpu.vector_store %arg4[%c0_103, %c0_104, %c9, %c0_105], %106 {strides = array<i32>} : memref<1x8x16x16xf32, #tpu.memory_space<vmem>>, vector<1x8x1x16xf32>,
    %c0_106 = arith.constant 0 : index
    %c180 = arith.constant 180 : index
    %107 = vector.load %arg5[%c0_106, %c180] : memref<8x288xf32, #tpu.memory_space<vmem>>, vector<8x16xf32>
    %c0_107 = arith.constant 0 : index
    %c0_108 = arith.constant 0 : index
    %c10 = arith.constant 10 : index
    %c0_109 = arith.constant 0 : index
    %108 = vector.load %arg4[%c0_107, %c0_108, %c10, %c0_109] : memref<1x8x16x16xf32, #tpu.memory_space<vmem>>, vector<1x8x1x16xf32>
    %109 = vector.shape_cast %108 : vector<1x8x1x16xf32> to vector<8x16xf32>
    %110 = vector.shape_cast %107 : vector<8x16xf32> to vector<1x8x1x16xf32>
    tpu.vector_store %arg4[%c0_107, %c0_108, %c10, %c0_109], %110 {strides = array<i32>} : memref<1x8x16x16xf32, #tpu.memory_space<vmem>>, vector<1x8x1x16xf32>,
    %c0_110 = arith.constant 0 : index
    %c198 = arith.constant 198 : index
    %111 = vector.load %arg5[%c0_110, %c198] : memref<8x288xf32, #tpu.memory_space<vmem>>, vector<8x16xf32>
    %c0_111 = arith.constant 0 : index
    %c0_112 = arith.constant 0 : index
    %c11 = arith.constant 11 : index
    %c0_113 = arith.constant 0 : index
    %112 = vector.load %arg4[%c0_111, %c0_112, %c11, %c0_113] : memref<1x8x16x16xf32, #tpu.memory_space<vmem>>, vector<1x8x1x16xf32>
    %113 = vector.shape_cast %112 : vector<1x8x1x16xf32> to vector<8x16xf32>
    %114 = vector.shape_cast %111 : vector<8x16xf32> to vector<1x8x1x16xf32>
    tpu.vector_store %arg4[%c0_111, %c0_112, %c11, %c0_113], %114 {strides = array<i32>} : memref<1x8x16x16xf32, #tpu.memory_space<vmem>>, vector<1x8x1x16xf32>,
    %c0_114 = arith.constant 0 : index
    %c216 = arith.constant 216 : index
    %115 = vector.load %arg5[%c0_114, %c216] : memref<8x288xf32, #tpu.memory_space<vmem>>, vector<8x16xf32>
    %c0_115 = arith.constant 0 : index
    %c0_116 = arith.constant 0 : index
    %c12 = arith.constant 12 : index
    %c0_117 = arith.constant 0 : index
    %116 = vector.load %arg4[%c0_115, %c0_116, %c12, %c0_117] : memref<1x8x16x16xf32, #tpu.memory_space<vmem>>, vector<1x8x1x16xf32>
    %117 = vector.shape_cast %116 : vector<1x8x1x16xf32> to vector<8x16xf32>
    %118 = vector.shape_cast %115 : vector<8x16xf32> to vector<1x8x1x16xf32>
    tpu.vector_store %arg4[%c0_115, %c0_116, %c12, %c0_117], %118 {strides = array<i32>} : memref<1x8x16x16xf32, #tpu.memory_space<vmem>>, vector<1x8x1x16xf32>,
    %c0_118 = arith.constant 0 : index
    %c234 = arith.constant 234 : index
    %119 = vector.load %arg5[%c0_118, %c234] : memref<8x288xf32, #tpu.memory_space<vmem>>, vector<8x16xf32>
    %c0_119 = arith.constant 0 : index
    %c0_120 = arith.constant 0 : index
    %c13 = arith.constant 13 : index
    %c0_121 = arith.constant 0 : index
    %120 = vector.load %arg4[%c0_119, %c0_120, %c13, %c0_121] : memref<1x8x16x16xf32, #tpu.memory_space<vmem>>, vector<1x8x1x16xf32>
    %121 = vector.shape_cast %120 : vector<1x8x1x16xf32> to vector<8x16xf32>
    %122 = vector.shape_cast %119 : vector<8x16xf32> to vector<1x8x1x16xf32>
    tpu.vector_store %arg4[%c0_119, %c0_120, %c13, %c0_121], %122 {strides = array<i32>} : memref<1x8x16x16xf32, #tpu.memory_space<vmem>>, vector<1x8x1x16xf32>,
    %c0_122 = arith.constant 0 : index
    %c252 = arith.constant 252 : index
    %123 = vector.load %arg5[%c0_122, %c252] : memref<8x288xf32, #tpu.memory_space<vmem>>, vector<8x16xf32>
    %c0_123 = arith.constant 0 : index
    %c0_124 = arith.constant 0 : index
    %c14 = arith.constant 14 : index
    %c0_125 = arith.constant 0 : index
    %124 = vector.load %arg4[%c0_123, %c0_124, %c14, %c0_125] : memref<1x8x16x16xf32, #tpu.memory_space<vmem>>, vector<1x8x1x16xf32>
    %125 = vector.shape_cast %124 : vector<1x8x1x16xf32> to vector<8x16xf32>
    %126 = vector.shape_cast %123 : vector<8x16xf32> to vector<1x8x1x16xf32>
    tpu.vector_store %arg4[%c0_123, %c0_124, %c14, %c0_125], %126 {strides = array<i32>} : memref<1x8x16x16xf32, #tpu.memory_space<vmem>>, vector<1x8x1x16xf32>,
    %c0_126 = arith.constant 0 : index
    %c270 = arith.constant 270 : index
    %127 = vector.load %arg5[%c0_126, %c270] : memref<8x288xf32, #tpu.memory_space<vmem>>, vector<8x16xf32>
    %c0_127 = arith.constant 0 : index
    %c0_128 = arith.constant 0 : index
    %c15 = arith.constant 15 : index
    %c0_129 = arith.constant 0 : index
    %128 = vector.load %arg4[%c0_127, %c0_128, %c15, %c0_129] : memref<1x8x16x16xf32, #tpu.memory_space<vmem>>, vector<1x8x1x16xf32>
    %129 = vector.shape_cast %128 : vector<1x8x1x16xf32> to vector<8x16xf32>
    %130 = vector.shape_cast %127 : vector<8x16xf32> to vector<1x8x1x16xf32>
    tpu.vector_store %arg4[%c0_127, %c0_128, %c15, %c0_129], %130 {strides = array<i32>} : memref<1x8x16x16xf32, #tpu.memory_space<vmem>>, vector<1x8x1x16xf32>,
    return
  }
  func.func @transform_0(%arg0: i32) -> (i32, i32, i32) {
    %c0_i32 = arith.constant 0 : i32
    %c0_i32_0 = arith.constant 0 : i32
    %c0_i32_1 = arith.constant 0 : i32
    return %arg0, %c0_i32, %c0_i32_0 : i32, i32, i32
  }
  func.func @transform_1(%arg0: i32) -> (i32, i32, i32) {
    %c0_i32 = arith.constant 0 : i32
    %c0_i32_0 = arith.constant 0 : i32
    %c0_i32_1 = arith.constant 0 : i32
    %c0_i32_2 = arith.constant 0 : i32
    return %c0_i32, %c0_i32_0, %c0_i32_1 : i32, i32, i32
  }
  func.func @transform_2(%arg0: i32) -> (i32, i32) {
    %c0_i32 = arith.constant 0 : i32
    %c0_i32_0 = arith.constant 0 : i32
    %c0_i32_1 = arith.constant 0 : i32
    return %c0_i32, %c0_i32_0 : i32, i32
  }
  func.func @transform_3(%arg0: i32) -> (i32, i32, i32, i32) {
    %c0_i32 = arith.constant 0 : i32
    %c0_i32_0 = arith.constant 0 : i32
    %c0_i32_1 = arith.constant 0 : i32
    %c0_i32_2 = arith.constant 0 : i32
    return %arg0, %c0_i32, %c0_i32_0, %c0_i32_1 : i32, i32, i32, i32
  }
}

</mosaic_0001>

<bundles_post_ra>
// kernel: gated_conv2d.1
= control target key start
LH: loop header
LB: loop body
LE: loop exit
PB: predicated region body
PF: predicated region fallthrough
CT: control target
= control target key end

     0   :  { %8 = vsyncpa [#allocation4], 0  ;;  %s2991_s0 = inlined_call_operand.vmem [shape: bf16[2,4,384], index: 0, kind: input, shape index: {}]   ;;  %s2992_s1 = inlined_call_operand.vmem [shape: bf16[9,16,4], index: 1, kind: input, shape index: {}]   ;;  %s2993_s2 = inlined_call_operand.vmem [shape: f32[16,1], index: 2, kind: input, shape index: {}]   ;;  %s2994_s3 = inlined_call_operand.hbm [shape: f32[2,8,16,16], index: 3, kind: output, shape index: {}]  }
   0x1   :  { %10 = vsyncpa [#allocation4 + $0x1], 0  ;;  %s2166_s12 = smov 0   ;;  %s2168_s13 = smov 0  }
   0x2   :  { %s2170_s14 = smov 0   ;;  %s2172_s15 = smov 0  }
   0x3 LB: > { %s2187_s16 = sadd.s32 4294967295, %s2120_s15   ;;  %s1886_s17 = sadd.s32 4294967294, %s2120_s15   ;;  %s2120_s15 = sphi %s2172_s15, %s3000_s15   ;;  %s2116_s14 = sphi %s2170_s14, %s2999_s14   ;;  %s2112_s13 = sphi %s2168_s13, %s2998_s13   ;;  %s2108_s12 = sphi %s2166_s12, %s2997_s12  }
   0x4   : > { %s2191_s18 = sadd.s32 1, %s2120_s15   ;;  %s91_s19 = sadd.s32 1, %s2116_s14 }
   0x5   : > { %s88_s20 = ssub.s32 %s2120_s15, %s2191_s18  ;;  %p101_p0 = scmp.ne.s32.totalorder %s2116_s14, %s2112_s13 }
   0x6   : > { %p89_p1 = scmp.eq.s32.totalorder %s88_s20, 0  ;;  %p102_p2 = scmp.eq.s32.totalorder %s2187_s16, 1 }
   0x7   : > { %p107_p3 = scmp.ne.s32.totalorder %s2112_s13, %s2108_s12  ;;  %p108_p4 = scmp.eq.s32.totalorder %s1886_s17, 1 }
   0x8   : > { %s2202_s21 = scalar_select %p89_p1, %s2116_s14, %s91_s19  }
   0x9   : > { %p2204_p5 = por %p102_p2, %p101_p0  ;;  %p2208_p6 = por %p108_p4, %p107_p3 }
   0xa   : > { %p1889_p7 = scmp.ge.s32.totalorder %s2120_s15, 1  ;;  %p140_p8 = scmp.lt.s32.totalorder %s2120_s15, 3 }
   0xc   : > { %p141_p9 = pnand %p1889_p7, %p140_p8 }
   0xd   : > { %p164_p10 = scmp.lt.s32.totalorder (!%p141_p9), %s2187_s16, 1  ;;  %s2123_s4 = smov (!%p141_p9), 127  }
   0xe   : > { %144 = sbr.rel (%p141_p9) target bundleno = 886 (0x376), region = 32  ;;  %s2124_s7 = smov (!%p141_p9), 126  }
   0xf   : > { %s2125_s8 = smov (!%p141_p9), 110   ;;  %s2126_s9 = smov (!%p141_p9), 109  }
  0x10   : > { %s2127_s10 = smov (!%p141_p9), 108   ;;  %s2128_s11 = smov (!%p141_p9), 92  }
  0x11   : > { %s2129_s17 = smov (!%p141_p9), 91   ;;  %s2130_s19 = smov (!%p141_p9), 90  }
  0x12   : > { %s161_s25 = sand.u32 (!%p141_p9), 1, %s2112_s13   ;;  %s2131_s28 = smov (!%p141_p9), 56  }
  0x13   : > { %v917_v0 = vld [vmem:[%s2993_s2 + $0x8] sm:$0xff]  ;;  %v2122_v1 = vmov 0   ;;  %s165_s26 = scalar_select %p164_p10, %s2187_s16, 1  ;;  %v916_v10 = vld [vmem:[%s2993_s2] sm:$0xff]  ;;  %vm202_vm0 = vcmask 1041408   ;;  %vm198_vm1 = vcmask 31744  }
  0x14   : > { %2051 = vset.pattern.permute.xlu1 %v2122_v1  ;;  %2050 = vset.pattern.permute.xlu0 %v2122_v1  ;;  %v1976_v39 = vld [vmem:[%s2992_s1] sm:$0xff]  ;;  %v1977_v45 = vld [vmem:[%s2992_s1 + $0x8] sm:$0xff]  ;;  %vm337_vm2 = vcmask 1031168   ;;  %vm195_vm3 = vcmask 1039360   ;;  %v1978_v49 = vld [vmem:[%s2992_s1 + $0x10] sm:$0xff]  ;;  %vm423_vm4 = vcmask 900096  }
  0x15   : > { %925 = vperm.xlu1 %2051, %v917_v0   ;;  %s1986_s27 = smul.u32 6, %s165_s26  ;;  %v1979_v0 = vld [vmem:[%s2992_s1 + $0x18] sm:$0xff]  ;;  %vm509_vm5 = vcmask 891904   ;;  %vm595_vm6 = vcmask 883712   ;;  %vm681_vm7 = vcmask 752640   ;;  %vm767_vm8 = vcmask 744448  }
  0x16   : > { %vm853_vm9 = vcmask 736256   ;;  %s1890_s26 = sshll.u32 %s161_s25, 7  ;;  %vm951_vm10 = vcmask 261120   ;;  %vm969_vm11 = vcmask 122880   ;;  %s2132_s29 = smov 74   ;;  %vm1277_vm12 = vcmask 1040384  }
  0x17   : > { %s2222_s30 = scalar_lea.vmem %s2991_s0, %s1986_s27  ;;  %s2357_s27 = scalar_lea.vmem [#allocation3], %s1890_s26  ;;  %vm1279_vm13 = vcmask 1041409   ;;  %vm1285_vm14 = vcmask 1043459   ;;  %vm1282_vm15 = vcmask 1042434  }
  0x18   : > { %v170_v2 = vld [vmem:[%s2222_s30] sm:$0x3f]  ;;  %s2135_s5 = smov 40   ;;  %s2136_s6 = smov 112  }
  0x19   : > { %182 = vst [vmem:[#allocation1] ss:$4 sm:$0xff] %v170_v2  ;;  %v314_v6 = vld [vmem:[%s2222_s30] sm:$0x3f]  ;;  %s1985_s20 = sshll.u32 %s2187_s16, 7  ;;  %s1809_s16 = scalar_lea.sflag [#allocation4], %s161_s25 }
  0x1a   : > { %v400_v11 = vld [vmem:[%s2222_s30] sm:$0x3f] }
  0x1b   : > { %v486_v15 = vld [vmem:[%s2222_s30] sm:$0x3f] }
  0x1c   : > { %v572_v19 = vld [vmem:[%s2222_s30] sm:$0x3f] }
  0x1d   : > { %v658_v23 = vld [vmem:[%s2222_s30] sm:$0x3f] }
  0x1e   : > { %v744_v27 = vld [vmem:[%s2222_s30] sm:$0x3f] }
  0x1f   : > { %v830_v31 = vld [vmem:[%s2222_s30] sm:$0x3f]  ;;  %s2133_s30 = smov 94  }
  0x20   : > { %v183_v3 = vld.sshfl [vmem:[#allocation1] sm:$0xff pattern:$0x73625140]  ;;  %v187_v4 = vld.sshfl [vmem:[#allocation1 + $0x10] sm:$0xff pattern:$0x73625140] }
  0x21   : > { %189 = vrot.lane.b32.xlu0 %v183_v3, %s2123_s4  ;;  %193 = vrot.lane.b32.xlu1 %v187_v4, %s2123_s4  ;;  %v185_v5 = vld.sshfl [vmem:[#allocation1 + $0x8] sm:$0xff pattern:$0x73625140] }
  0x22   : > { %259 = vst [vmem:[#allocation1] ss:$4 sm:$0xff] %v170_v2 }
  0x29   : > { %191 = vrot.lane.b32.xlu0 %v185_v5, %s2123_s4  ;;  %v2226_v7 = vld.sshfl [vmem:[#allocation1] sm:$0xff pattern:$0x73625140]  ;;  %v2228_v8 = vld.sshfl [vmem:[#allocation1 + $0x8] sm:$0xff pattern:$0x73625140] }
  0x2a   : > { %v2230_v9 = vld.sshfl [vmem:[#allocation1 + $0x10] sm:$0xff pattern:$0x73625140]  ;;  %v266_v38 = vsel %vm202_vm0, %v2226_v7, 0  ;;  %v268_v53 = vsel %vm202_vm0, %v2228_v8, 0  ;;  %s2134_s4 = smov 20  }
  0x2b   : > { %324 = vst [vmem:[#allocation1] ss:$4 sm:$0xff] %v314_v6  ;;  %279 = vmatpush.bf16.msra.mxu3 %v266_v38  ;;  %v270_v54 = vsel %vm202_vm0, %v2230_v9, 0 }
  0x2e   : > { %1905 = vmatmul.msk.bf16.vlgmr.msra.gmra.mxu3 %vm198_vm1, %v1976_v39 }
  0x31   : > { %920 = vperm.xlu0 %2050, %v916_v10  }
  0x32   : > { %v325_v12 = vld.sshfl [vmem:[#allocation1] sm:$0xff pattern:$0x73625140]  ;;  %v327_v13 = vld.sshfl [vmem:[#allocation1 + $0x8] sm:$0xff pattern:$0x73625140] }
  0x33   : > { %331 = vrot.lane.b32.xlu1 %v325_v12, %s2124_s7  ;;  %v329_v14 = vld.sshfl [vmem:[#allocation1 + $0x10] sm:$0xff pattern:$0x73625140]  ;;  %333 = vrot.lane.b32.xlu2 %v327_v13, %s2124_s7 }
  0x34   : > { %410 = vst [vmem:[#allocation1] ss:$4 sm:$0xff] %v400_v11 }
  0x3b   : > { %v413_v16 = vld.sshfl [vmem:[#allocation1 + $0x8] sm:$0xff pattern:$0x73625140]  ;;  %v415_v17 = vld.sshfl [vmem:[#allocation1 + $0x10] sm:$0xff pattern:$0x73625140]  ;;  %335 = vrot.lane.b32.xlu2 %v329_v14, %s2124_s7 }
  0x3c   : > { %419 = vrot.lane.b32.xlu1 %v413_v16, %s2125_s8  ;;  %v411_v18 = vld.sshfl [vmem:[#allocation1] sm:$0xff pattern:$0x73625140]  ;;  %s2137_s7 = smov 38  }
  0x3d   : > { %417 = vrot.lane.b32.xlu0 %v411_v18, %s2125_s8  ;;  %496 = vst [vmem:[#allocation1] ss:$4 sm:$0xff] %v486_v15 }
  0x43   : > { %421 = vrot.lane.b32.xlu2 %v415_v17, %s2125_s8 }
  0x44   : > { %v499_v20 = vld.sshfl [vmem:[#allocation1 + $0x8] sm:$0xff pattern:$0x73625140]  ;;  %v501_v21 = vld.sshfl [vmem:[#allocation1 + $0x10] sm:$0xff pattern:$0x73625140] }
  0x45   : > { %505 = vrot.lane.b32.xlu1 %v499_v20, %s2126_s9  ;;  %v497_v22 = vld.sshfl [vmem:[#allocation1] sm:$0xff pattern:$0x73625140] }
  0x46   : > { %503 = vrot.lane.b32.xlu0 %v497_v22, %s2126_s9  ;;  %582 = vst [vmem:[#allocation1] ss:$4 sm:$0xff] %v572_v19 }
  0x4b   : > { %507 = vrot.lane.b32.xlu2 %v501_v21, %s2126_s9  ;;  %s2138_s9 = smov 58  }
  0x4d   : > { %v585_v24 = vld.sshfl [vmem:[#allocation1 + $0x8] sm:$0xff pattern:$0x73625140]  ;;  %v587_v25 = vld.sshfl [vmem:[#allocation1 + $0x10] sm:$0xff pattern:$0x73625140] }
  0x4e   : > { %591 = vrot.lane.b32.xlu1 %v585_v24, %s2127_s10  ;;  %v583_v26 = vld.sshfl [vmem:[#allocation1] sm:$0xff pattern:$0x73625140]  ;;  %v1981_v24 = vld [vmem:[%s2992_s1 + $0x28] sm:$0xff] }
  0x4f   : > { %589 = vrot.lane.b32.xlu0 %v583_v26, %s2127_s10  ;;  %668 = vst [vmem:[#allocation1] ss:$4 sm:$0xff] %v658_v23 }
  0x53   : > { %593 = vrot.lane.b32.xlu2 %v587_v25, %s2127_s10  ;;  %v1980_v25 = vld [vmem:[%s2992_s1 + $0x20] sm:$0xff]  ;;  %s2139_s10 = smov 76  }
  0x56   : > { %v673_v28 = vld.sshfl [vmem:[#allocation1 + $0x10] sm:$0xff pattern:$0x73625140]  ;;  %v671_v29 = vld.sshfl [vmem:[#allocation1 + $0x8] sm:$0xff pattern:$0x73625140] }
  0x57   : > { %677 = vrot.lane.b32.xlu1 %v671_v29, %s2128_s11  ;;  %v669_v30 = vld.sshfl [vmem:[#allocation1] sm:$0xff pattern:$0x73625140] }
  0x58   : > { %675 = vrot.lane.b32.xlu0 %v669_v30, %s2128_s11  ;;  %754 = vst [vmem:[#allocation1] ss:$4 sm:$0xff] %v744_v27 }
  0x5b   : > { %679 = vrot.lane.b32.xlu2 %v673_v28, %s2128_s11 }
  0x5f   : > { %v759_v32 = vld.sshfl [vmem:[#allocation1 + $0x10] sm:$0xff pattern:$0x73625140]  ;;  %v757_v33 = vld.sshfl [vmem:[#allocation1 + $0x8] sm:$0xff pattern:$0x73625140] }
  0x60   : > { %763 = vrot.lane.b32.xlu1 %v757_v33, %s2129_s17  ;;  %v755_v34 = vld.sshfl [vmem:[#allocation1] sm:$0xff pattern:$0x73625140] }
  0x61   : > { %761 = vrot.lane.b32.xlu0 %v755_v34, %s2129_s17  ;;  %840 = vst [vmem:[#allocation1] ss:$4 sm:$0xff] %v830_v31 }
  0x63   : > { %765 = vrot.lane.b32.xlu2 %v759_v32, %s2129_s17  ;;  %s2140_s17 = smov 22  }
  0x68   : > { %v843_v35 = vld.sshfl [vmem:[#allocation1 + $0x8] sm:$0xff pattern:$0x73625140]  ;;  %v841_v36 = vld.sshfl [vmem:[#allocation1] sm:$0xff pattern:$0x73625140] }
  0x69   : > { %849 = vrot.lane.b32.xlu1 %v843_v35, %s2130_s19  ;;  %847 = vrot.lane.b32.xlu0 %v841_v36, %s2130_s19  ;;  %v845_v37 = vld.sshfl [vmem:[#allocation1 + $0x10] sm:$0xff pattern:$0x73625140] }
  0x6b   : > { %851 = vrot.lane.b32.xlu2 %v845_v37, %s2130_s19  ;;  %s2143_s19 = smov 114  }
  0x87   : > { %v2253_v40 = vpop.permute.xlu1 %925 }
  0x8d   : > { %v334_v41 = vpop.permute.xlu2 %333 }
  0x93   : > { %v190_v42 = vpop.permute.xlu0 %189  ;;  %v194_v43 = vpop.permute.xlu1 %193 }
  0x94   : > { %v210_v44 = vsel %vm202_vm0, %v194_v43, 0 }
  0x95   : > { %247 = vmatpush.bf16.msra.mxu2 %v210_v44  ;;  %v336_v46 = vpop.permute.xlu2 %335 }
  0x96   : > { %v339_v47 = vsel %vm337_vm2, %v334_v41, %v336_v46  ;;  %v350_v59 = vsel %vm202_vm0, %v336_v46, 0 }
  0x97   : > { %v347_v48 = vsel %vm202_vm0, %v339_v47, 0 }
  0x98   : > { %1900 = vmatmul.msk.bf16.vlgmr.msra.gmra.mxu2 %vm198_vm1, %v1977_v45  ;;  %373 = vmatpush.bf16.msrb.mxu3 %v347_v48 }
  0x9b   : > { %v192_v50 = vpop.permute.xlu0 %191  ;;  %1915 = vmatmul.msk.bf16.vlgmr.msrb.gmra.mxu3 %vm198_vm1, %v1978_v49 }
  0x9c   : > { %v196_v51 = vsel %vm195_vm3, %v190_v42, %v192_v50  ;;  %v197_v52 = vsel %vm195_vm3, %v192_v50, %v194_v43  ;;  %vm1291_vm3 = vcmask 1045509  }
  0x9d   : > { %v204_v55 = vsel %vm202_vm0, %v196_v51, 0  ;;  %v207_v56 = vsel %vm202_vm0, %v197_v52, 0  ;;  %v422_v57 = vpop.permute.xlu2 %421  ;;  %v1983_v51 = vld [vmem:[%s2992_s1 + $0x38] sm:$0xff]  ;;  %v1984_v52 = vld [vmem:[%s2992_s1 + $0x40] sm:$0xff] }
  0x9e   : > { %219 = vmatpush.bf16.msra.mxu0 %v204_v55  ;;  %233 = vmatpush.bf16.msra.mxu1 %v207_v56  ;;  %v436_v58 = vsel %vm202_vm0, %v422_v57, 0 }
  0x9f   : > { %473 = vmatpush.bf16.msra.mxu3 %v436_v58 }
  0xa1   : > { %1898 = vmatmul.msk.bf16.vlgmr.msra.gmra.mxu0 %vm198_vm1, %v1977_v45  ;;  %1899 = vmatmul.msk.bf16.vlgmr.msra.gmra.mxu1 %vm198_vm1, %v1977_v45 }
  0xa2   : > { %293 = vmatpush.bf16.msrb.mxu0 %v268_v53  ;;  %307 = vmatpush.bf16.msrb.mxu1 %v270_v54 }
  0xa3   : > { %v2276_v61 = vpop.permute.xlu0 %920 }
  0xa5   : > { %v332_v60 = vpop.permute.xlu1 %331  ;;  %v508_v1 = vpop.permute.xlu2 %507 }
  0xa6   : > { %387 = vmatpush.bf16.msra.mxu0 %v350_v59  ;;  %v338_v62 = vsel %vm337_vm2, %v332_v60, %v334_v41  ;;  %v522_v7 = vsel %vm202_vm0, %v508_v1, 0  ;;  %v1982_v41 = vld [vmem:[%s2992_s1 + $0x30] sm:$0xff]  ;;  %vm1294_vm2 = vcmask 1046534  }
  0xa7   : > { %v344_v63 = vsel %vm202_vm0, %v338_v62, 0 }
  0xa8   : > { %359 = vmatpush.bf16.msrb.mxu2 %v344_v63 }
  0xab   : > { %1914 = vmatmul.msk.bf16.vlgmr.msrb.gmra.mxu2 %vm198_vm1, %v1978_v49  ;;  %1925 = vmatmul.msk.bf16.vlgmr.msra.gmra.mxu3 %vm198_vm1, %v1979_v0 }
  0xad   : > { %v594_v10 = vpop.permute.xlu2 %593 }
  0xae   : > { %v420_v2 = vpop.permute.xlu1 %419  ;;  %v608_v16 = vsel %vm202_vm0, %v594_v10, 0 }
  0xaf   : > { %v425_v3 = vsel %vm423_vm4, %v420_v2, %v422_v57  ;;  %v418_v4 = vpop.permute.xlu0 %417 }
  0xb0   : > { %v433_v5 = vsel %vm202_vm0, %v425_v3, 0  ;;  %v424_v6 = vsel %vm423_vm4, %v418_v4, %v420_v2  ;;  %vm1297_vm4 = vcmask 1046528  }
  0xb1   : > { %1906 = vmatmul.msk.bf16.vlgmr.msrb.gmra.mxu0 %vm198_vm1, %v1976_v39  ;;  %1907 = vmatmul.msk.bf16.vlgmr.msrb.gmra.mxu1 %vm198_vm1, %v1976_v39  ;;  %v430_v8 = vsel %vm202_vm0, %v424_v6, 0  ;;  %v281_v53 = vpop.f32.mrf.mxu3 }
  0xb2   : > { %459 = vmatpush.bf16.msra.mxu2 %v433_v5  ;;  %445 = vmatpush.bf16.msra.mxu1 %v430_v8 }
  0xb5   : > { %v680_v20 = vpop.permute.xlu2 %679 }
  0xb6   : > { %559 = vmatpush.bf16.msrb.mxu2 %v522_v7  ;;  %v694_v34 = vsel %vm202_vm0, %v680_v20, 0 }
  0xb7   : > { %v506_v9 = vpop.permute.xlu1 %505 }
  0xb8   : > { %v511_v11 = vsel %vm509_vm5, %v506_v9, %v508_v1  ;;  %v504_v12 = vpop.permute.xlu0 %503 }
  0xb9   : > { %v510_v13 = vsel %vm509_vm5, %v504_v12, %v506_v9  ;;  %v519_v14 = vsel %vm202_vm0, %v511_v11, 0  ;;  %v283_v58 = vpop.f32.mrf.mxu3  ;;  %vm1348_vm5 = vcmask 15360  }
  0xba   : > { %v516_v15 = vsel %vm202_vm0, %v510_v13, 0  ;;  %545 = vmatpush.bf16.msrb.mxu1 %v519_v14 }
  0xbb   : > { %1924 = vmatmul.msk.bf16.vlgmr.msra.gmra.mxu2 %vm198_vm1, %v1979_v0  ;;  %531 = vmatpush.bf16.msrb.mxu0 %v516_v15 }
  0xbd   : > { %v766_v27 = vpop.permute.xlu2 %765 }
  0xbe   : > { %v780_v30 = vsel %vm202_vm0, %v766_v27, 0 }
  0xc0   : > { %v592_v17 = vpop.permute.xlu1 %591 }
  0xc1   : > { %1916 = vmatmul.msk.bf16.vlgmr.msra.gmra.mxu0 %vm198_vm1, %v1978_v49  ;;  %1923 = vmatmul.msk.bf16.vlgmr.msra.gmra.mxu1 %vm198_vm1, %v1979_v0  ;;  %v590_v18 = vpop.permute.xlu0 %589  ;;  %v597_v19 = vsel %vm595_vm6, %v592_v17, %v594_v10 }
  0xc2   : > { %v596_v21 = vsel %vm595_vm6, %v590_v18, %v592_v17  ;;  %645 = vmatpush.bf16.msra.mxu1 %v608_v16  ;;  %v605_v22 = vsel %vm202_vm0, %v597_v19, 0 }
  0xc3   : > { %v602_v23 = vsel %vm202_vm0, %v596_v21, 0  ;;  %631 = vmatpush.bf16.msra.mxu0 %v605_v22 }
  0xc4   : > { %617 = vmatpush.bf16.msrb.mxu3 %v602_v23 }
  0xc5   : > { %v852_v43 = vpop.permute.xlu2 %851 }
  0xc6   : > { %v866_v44 = vsel %vm202_vm0, %v852_v43, 0 }
  0xc7   : > { %1941 = vmatmul.msk.bf16.vlgmr.msrb.gmra.mxu3 %vm198_vm1, %v1981_v24 }
  0xc9   : > { %v678_v26 = vpop.permute.xlu1 %677 }
  0xca   : > { %v676_v28 = vpop.permute.xlu0 %675  ;;  %v683_v29 = vsel %vm681_vm7, %v678_v26, %v680_v20 }
  0xcb   : > { %1934 = vmatmul.msk.bf16.vlgmr.msrb.gmra.mxu2 %vm198_vm1, %v1980_v25  ;;  %v682_v31 = vsel %vm681_vm7, %v676_v28, %v678_v26  ;;  %v691_v32 = vsel %vm202_vm0, %v683_v29, 0 }
  0xcc   : > { %v688_v33 = vsel %vm202_vm0, %v682_v31, 0  ;;  %717 = vmatpush.bf16.msra.mxu3 %v691_v32 }
  0xcd   : > { %703 = vmatpush.bf16.msra.mxu2 %v688_v33 }
  0xd0   : > { %817 = vmatpush.bf16.msrb.mxu3 %v780_v30 }
  0xd1   : > { %1932 = vmatmul.msk.bf16.vlgmr.msrb.gmra.mxu0 %vm198_vm1, %v1980_v25  ;;  %1933 = vmatmul.msk.bf16.vlgmr.msrb.gmra.mxu1 %vm198_vm1, %v1980_v25 }
  0xd2   : > { %731 = vmatpush.bf16.msrb.mxu0 %v694_v34  ;;  %v764_v35 = vpop.permute.xlu1 %763 }
  0xd3   : > { %v769_v36 = vsel %vm767_vm8, %v764_v35, %v766_v27  ;;  %v762_v37 = vpop.permute.xlu0 %761 }
  0xd4   : > { %v777_v38 = vsel %vm202_vm0, %v769_v36, 0  ;;  %v768_v39 = vsel %vm767_vm8, %v762_v37, %v764_v35 }
  0xd5   : > { %803 = vmatpush.bf16.msrb.mxu2 %v777_v38  ;;  %v774_v42 = vsel %vm202_vm0, %v768_v39, 0 }
  0xd6   : > { %789 = vmatpush.bf16.msrb.mxu1 %v774_v42 }
  0xd7   : > { %1951 = vmatmul.msk.bf16.vlgmr.msra.gmra.mxu3 %vm198_vm1, %v1982_v41 }
  0xdb   : > { %1950 = vmatmul.msk.bf16.vlgmr.msra.gmra.mxu2 %vm198_vm1, %v1982_v41  ;;  %v850_v45 = vpop.permute.xlu1 %849  ;;  %v848_v46 = vpop.permute.xlu0 %847 }
  0xdc   : > { %v855_v47 = vsel %vm853_vm9, %v850_v45, %v852_v43  ;;  %v854_v48 = vsel %vm853_vm9, %v848_v46, %v850_v45  ;;  %903 = vmatpush.bf16.msra.mxu2 %v866_v44 }
  0xdd   : > { %v863_v49 = vsel %vm202_vm0, %v855_v47, 0  ;;  %v860_v50 = vsel %vm202_vm0, %v854_v48, 0  ;;  %vm1288_vm0 = vcmask 1044484  }
  0xe1   : > { %1942 = vmatmul.msk.bf16.vlgmr.msra.gmra.mxu0 %vm198_vm1, %v1981_v24  ;;  %1943 = vmatmul.msk.bf16.vlgmr.msra.gmra.mxu1 %vm198_vm1, %v1981_v24 }
  0xe2   : > { %875 = vmatpush.bf16.msra.mxu0 %v860_v50  ;;  %889 = vmatpush.bf16.msra.mxu1 %v863_v49 }
  0xe7   : > { %1961 = vmatmul.msk.bf16.vlgmr.msrb.gmra.mxu3 %vm198_vm1, %v1983_v51 }
  0xeb   : > { %1960 = vmatmul.msk.bf16.vlgmr.msrb.gmra.mxu2 %vm198_vm1, %v1983_v51 }
  0xf1   : > { %1952 = vmatmul.msk.bf16.vlgmr.msrb.gmra.mxu0 %vm198_vm1, %v1982_v41  ;;  %1959 = vmatmul.msk.bf16.vlgmr.msrb.gmra.mxu1 %vm198_vm1, %v1983_v51 }
  0xfb   : > { %1970 = vmatmul.msk.bf16.vlgmr.msra.gmra.mxu2 %vm198_vm1, %v1984_v52 }
 0x101   : > { %1968 = vmatmul.msk.bf16.vlgmr.msra.gmra.mxu0 %vm198_vm1, %v1984_v52  ;;  %1969 = vmatmul.msk.bf16.vlgmr.msra.gmra.mxu1 %vm198_vm1, %v1984_v52 }
 0x11b   : > { %v249_v54 = vpop.f32.mrf.mxu2 }
 0x11e   : > { %v221_v55 = vpop.f32.mrf.mxu0  ;;  %v235_v56 = vpop.f32.mrf.mxu1 }
 0x11f   : > { %v282_v57 = vadd.f32 %v281_v53, %v221_v55  ;;  %v375_v0 = vpop.f32.mrf.mxu3 }
 0x123   : > { %v251_v59 = vpop.f32.mrf.mxu2 }
 0x126   : > { %v223_v60 = vpop.f32.mrf.mxu0  ;;  %v237_v62 = vpop.f32.mrf.mxu1 }
 0x127   : > { %v284_v63 = vadd.f32 %v283_v58, %v223_v60  ;;  %v377_v8 = vpop.f32.mrf.mxu3 }
 0x12e   : > { %v361_v1 = vpop.f32.mrf.mxu2  ;;  %v295_v2 = vpop.f32.mrf.mxu0 }
 0x12f   : > { %v394_v3 = vadd.f32 %v361_v1, %v282_v57  ;;  %v296_v4 = vadd.f32 %v295_v2, %v235_v56  ;;  %v309_v5 = vpop.f32.mrf.mxu1  ;;  %v475_v15 = vpop.f32.mrf.mxu3 }
 0x130   : > { %v310_v6 = vadd.f32 %v309_v5, %v249_v54 }
 0x131   : > { %v395_v7 = vadd.f32 %v375_v0, %v296_v4 }
 0x136   : > { %v363_v9 = vpop.f32.mrf.mxu2  ;;  %v297_v10 = vpop.f32.mrf.mxu0 }
 0x137   : > { %v397_v11 = vadd.f32 %v363_v9, %v284_v63  ;;  %v298_v12 = vadd.f32 %v297_v10, %v237_v62  ;;  %v311_v13 = vpop.f32.mrf.mxu1  ;;  %v477_v22 = vpop.f32.mrf.mxu3 }
 0x138   : > { %v312_v47 = vadd.f32 %v311_v13, %v251_v59 }
 0x139   : > { %v398_v14 = vadd.f32 %v377_v8, %v298_v12 }
 0x13e   : > { %v461_v16 = vpop.f32.mrf.mxu2  ;;  %v389_v17 = vpop.f32.mrf.mxu0 }
 0x13f   : > { %v2337_v18 = vadd.f32 %v461_v16, %v395_v7  ;;  %v396_v19 = vadd.f32 %v389_v17, %v310_v6  ;;  %v447_v20 = vpop.f32.mrf.mxu1 }
 0x140   : > { %v480_v21 = vadd.f32 %v447_v20, %v394_v3 }
 0x141   : > { %v482_v7 = vadd.f32 %v475_v15, %v396_v19 }
 0x146   : > { %v463_v23 = vpop.f32.mrf.mxu2  ;;  %v391_v24 = vpop.f32.mrf.mxu0 }
 0x147   : > { %v484_v25 = vadd.f32 %v463_v23, %v398_v14  ;;  %v449_v26 = vpop.f32.mrf.mxu1  ;;  %v399_v50 = vadd.f32 %v391_v24, %v312_v47 }
 0x148   : > { %v483_v53 = vadd.f32 %v449_v26, %v397_v11 }
 0x149   : > { %v485_v54 = vadd.f32 %v477_v22, %v399_v50 }
 0x14a   : > { %v619_v30 = vpop.f32.mrf.mxu3 }
 0x14e   : > { %v561_v27 = vpop.f32.mrf.mxu2  ;;  %v533_v28 = vpop.f32.mrf.mxu0 }
 0x14f   : > { %v547_v29 = vpop.f32.mrf.mxu1  ;;  %v568_v14 = vadd.f32 %v561_v27, %v482_v7  ;;  %v566_v17 = vadd.f32 %v533_v28, %v480_v21 }
 0x150   : > { %v567_v23 = vadd.f32 %v547_v29, %v2337_v18 }
 0x152   : > { %v621_v34 = vpop.f32.mrf.mxu3 }
 0x156   : > { %v563_v31 = vpop.f32.mrf.mxu2  ;;  %v535_v32 = vpop.f32.mrf.mxu0 }
 0x157   : > { %v549_v33 = vpop.f32.mrf.mxu1  ;;  %v571_v55 = vadd.f32 %v563_v31, %v485_v54  ;;  %v569_v56 = vadd.f32 %v535_v32, %v483_v53 }
 0x158   : > { %v570_v57 = vadd.f32 %v549_v33, %v484_v25  ;;  %v652_v33 = vadd.f32 %v619_v30, %v566_v17 }
 0x159   : > { %v655_v1 = vadd.f32 %v621_v34, %v569_v56 }
 0x15a   : > { %v719_v38 = vpop.f32.mrf.mxu3 }
 0x15e   : > { %v705_v35 = vpop.f32.mrf.mxu2  ;;  %v633_v36 = vpop.f32.mrf.mxu0 }
 0x15f   : > { %v647_v37 = vpop.f32.mrf.mxu1  ;;  %v653_v19 = vadd.f32 %v633_v36, %v567_v23  ;;  %v738_v27 = vadd.f32 %v705_v35, %v652_v33 }
 0x160   : > { %v654_v24 = vadd.f32 %v647_v37, %v568_v14 }
 0x161   : > { %v739_v21 = vadd.f32 %v719_v38, %v653_v19 }
 0x162   : > { %v721_v43 = vpop.f32.mrf.mxu3 }
 0x166   : > { %v707_v39 = vpop.f32.mrf.mxu2  ;;  %v635_v41 = vpop.f32.mrf.mxu0 }
 0x167   : > { %v649_v42 = vpop.f32.mrf.mxu1  ;;  %v656_v0 = vadd.f32 %v635_v41, %v570_v57  ;;  %v741_v4 = vadd.f32 %v707_v39, %v655_v1 }
 0x168   : > { %v657_v62 = vadd.f32 %v649_v42, %v571_v55 }
 0x169   : > { %v742_v59 = vadd.f32 %v721_v43, %v656_v0 }
 0x16a   : > { %v819_v52 = vpop.f32.mrf.mxu3 }
 0x16e   : > { %v805_v44 = vpop.f32.mrf.mxu2  ;;  %v733_v45 = vpop.f32.mrf.mxu0 }
 0x16f   : > { %v791_v46 = vpop.f32.mrf.mxu1  ;;  %v740_v31 = vadd.f32 %v733_v45, %v654_v24  ;;  %v825_v39 = vadd.f32 %v805_v44, %v739_v21 }
 0x170   : > { %v824_v34 = vadd.f32 %v791_v46, %v738_v27 }
 0x171   : > { %v826_v28 = vadd.f32 %v819_v52, %v740_v31 }
 0x172   : > { %v821_v3 = vpop.f32.mrf.mxu3 }
 0x176   : > { %v807_v48 = vpop.f32.mrf.mxu2  ;;  %v735_v49 = vpop.f32.mrf.mxu0 }
 0x177   : > { %v793_v51 = vpop.f32.mrf.mxu1  ;;  %v743_v2 = vadd.f32 %v735_v49, %v657_v62  ;;  %v828_v8 = vadd.f32 %v807_v48, %v742_v59 }
 0x178   : > { %v827_v5 = vadd.f32 %v793_v51, %v741_v4 }
 0x179   : > { %v829_v6 = vadd.f32 %v821_v3, %v743_v2 }
 0x17e   : > { %v905_v58 = vpop.f32.mrf.mxu2  ;;  %v877_v60 = vpop.f32.mrf.mxu0 }
 0x17f   : > { %v891_v63 = vpop.f32.mrf.mxu1  ;;  %v912_v18 = vadd.f32 %v905_v58, %v826_v28  ;;  %v910_v37 = vadd.f32 %v877_v60, %v824_v34 }
 0x180   : > { %v911_v41 = vadd.f32 %v891_v63, %v825_v39 }
 0x181   : > { %v930_v30 = vadd.f32 %v2276_v61, %v912_v18  ;;  %v928_v38 = vadd.f32 %v2276_v61, %v910_v37 }
 0x182   : > { %v929_v44 = vadd.f32 %v2276_v61, %v911_v41 }
 0x186   : > { %v907_v9 = vpop.f32.mrf.mxu2  ;;  %v879_v10 = vpop.f32.mrf.mxu0 }
 0x187   : > { %v915_v11 = vadd.f32 %v907_v9, %v829_v6  ;;  %v913_v12 = vadd.f32 %v879_v10, %v827_v5  ;;  %v893_v13 = vpop.f32.mrf.mxu1 }
 0x188   : > { %v914_v16 = vadd.f32 %v893_v13, %v828_v8 }
 0x189   : > { %v933_v20 = vadd.f32 %v2253_v40, %v915_v11  ;;  %v931_v22 = vadd.f32 %v2253_v40, %v913_v12 }
 0x18a   : > { %v932_v25 = vadd.f32 %v2253_v40, %v914_v16 }
 0x18b   : > { %v936_v26 = vmul.f32 0.5, %v933_v20  ;;  %v934_v15 = vmul.f32 0.5, %v931_v22 }
 0x18c   : > { %v935_v32 = vmul.f32 0.5, %v932_v25 }
 0x18d   : > { %2052 = vtanh.f32 %v936_v26 }
 0x18e   : > { %2054 = vtanh.f32 %v934_v15 }
 0x18f   : > { %2056 = vtanh.f32 %v935_v32 }
 0x193   : > { %v2053_v29 = vpop.eup %2052 }
 0x194   : > { %v2055_v40 = vpop.eup %2054  ;;  %v942_v42 = vmul.f32 0.5, %v2053_v29 }
 0x195   : > { %v2057_v36 = vpop.eup %2056  ;;  %v940_v43 = vmul.f32 0.5, %v2055_v40 }
 0x196   : > { %v945_v45 = vadd.f32 0.5, %v942_v42  ;;  %v941_v35 = vmul.f32 0.5, %v2057_v36 }
 0x197   : > { %v943_v46 = vadd.f32 0.5, %v940_v43 }
 0x198   : > { %v948_v47 = vmul.f32 %v945_v45, %v930_v30  ;;  %v944_v48 = vadd.f32 0.5, %v941_v35 }
 0x199   : > { %v2349_v49 = vmul.f32 %v943_v46, %v928_v38 }
 0x19a   : > { %952 = vst.msk [vmem:[#allocation2 + $0x10] sm:$0xff] %vm951_vm10, %v948_v47  ;;  %v2351_v50 = vmul.f32 %v944_v48, %v929_v44 }
 0x19b   : > { %v955_v51 = vrot.slane %v2349_v49, 1  ;;  %v956_v52 = vrot.slane %v2349_v49, 2  ;;  %v957_v53 = vrot.slane %v2349_v49, 3  ;;  %v958_v54 = vrot.slane %v2349_v49, 4  ;;  %970 = vst.msk [vmem:[%s2357_s27] sm:$0x1] %vm969_vm11, %v2349_v49 }
 0x19c   : > { %v1134_v61 = vperm.slane %v2349_v49, 0  ;;  %v959_v55 = vrot.slane %v2349_v49, 5  ;;  %v960_v56 = vrot.slane %v2349_v49, 6  ;;  %v961_v57 = vrot.slane %v2349_v49, 7 }
 0x19d   : > { %971 = vst.msk [vmem:[%s2357_s27 + $0x10] sm:$0x1] %vm969_vm11, %v955_v51  ;;  %v1431_v58 = vperm.slane %v2351_v50, 0  ;;  %v2388_v60 = vrot.slane %v2351_v50, 7  ;;  %v2433_v5 = vperm.slane %v957_v53, 0  ;;  %v988_v7 = vperm.slane %v955_v51, 0 }
 0x19e   : > { %972 = vst.msk [vmem:[%s2357_s27 + $0x20] sm:$0x1] %vm969_vm11, %v956_v52  ;;  %1142 = vrot.lane.b32.xlu0 %v1134_v61, %s2131_s28  ;;  %1093 = vrot.lane.b32.xlu1 %v1134_v61, %s2132_s29  ;;  %v2439_v6 = vperm.slane %v960_v56, 0  ;;  %v2445_v8 = vperm.slane %v958_v54, 0  ;;  %v989_v9 = vperm.slane %v956_v52, 0  ;;  %v2451_v10 = vperm.slane %v961_v57, 0 }
 0x19f   : > { %973 = vst.msk [vmem:[%s2357_s27 + $0x30] sm:$0x1] %vm969_vm11, %v957_v53  ;;  %995 = vrot.lane.b32.xlu2 %v1134_v61, %s2125_s8  ;;  %v2393_v62 = vsel %vm1277_vm12, %v2349_v49, %v2388_v60  ;;  %v2398_v63 = vsel %vm1279_vm13, %v2349_v49, %v2388_v60  ;;  %v2403_v0 = vsel %vm1285_vm14, %v2349_v49, %v2388_v60  ;;  %v992_v11 = vperm.slane %v959_v55, 0 }
 0x1a0   : > { %974 = vst.msk [vmem:[%s2357_s27 + $0x40] sm:$0x1] %vm969_vm11, %v958_v54  ;;  %v2408_v1 = vsel %vm1282_vm15, %v2349_v49, %v2388_v60  ;;  %v2413_v2 = vsel %vm1288_vm0, %v2349_v49, %v2388_v60  ;;  %v2418_v3 = vsel %vm1294_vm2, %v2349_v49, %v2388_v60  ;;  %v2426_v4 = vsel %vm1291_vm3, %v2349_v49, %v2388_v60 }
 0x1a1   : > { %975 = vst.msk [vmem:[%s2357_s27 + $0x50] sm:$0x1] %vm969_vm11, %v959_v55  ;;  %v2431_v59 = vsel %vm1297_vm4, %v2388_v60, %v2349_v49  ;;  %v1376_v15 = vrot.slane %v2351_v50, 2  ;;  %v1379_v27 = vrot.slane %v2351_v50, 5  ;;  %v1377_v21 = vrot.slane %v2351_v50, 3 }
 0x1a2   : > { %976 = vst.msk [vmem:[%s2357_s27 + $0x60] sm:$0x1] %vm969_vm11, %v960_v56  ;;  %v1380_v37 = vrot.slane %v2351_v50, 6  ;;  %v1375_v41 = vrot.slane %v2351_v50, 1  ;;  %v1378_v35 = vrot.slane %v2351_v50, 4  ;;  %v2595_v48 = vperm.slane %v2388_v60, 0 }
 0x1a3   : > { %977 = vst.msk [vmem:[%s2357_s27 + $0x70] sm:$0x1] %vm969_vm11, %v961_v57  ;;  %v2529_v31 = vperm.slane %v1376_v15, 0  ;;  %v2545_v34 = vperm.slane %v1379_v27, 0  ;;  %v2547_v39 = vperm.slane %v1377_v21, 0 }
 0x1a4   : > { %v2563_v42 = vperm.slane %v1380_v37, 0  ;;  %v2565_v36 = vperm.slane %v1375_v41, 0  ;;  %v2580_v38 = vperm.slane %v1378_v35, 0  ;;  %v1290_v41 = vrot.slane %v2413_v2, 4 }
 0x1a5   : > { %v1296_v35 = vrot.slane %v2418_v3, 6  ;;  %v2766_v3 = vld [vmem:[#allocation2 + $0x10] sm:$0xff] }
 0x1a6   : > { %1439 = vrot.lane.b32.xlu0 %v1431_v58, %s2133_s30  ;;  %1240 = vrot.lane.b32.xlu1 %v1134_v61, %s2134_s4 }
 0x1a7   : > { %1044 = vrot.lane.b32.xlu2 %v1134_v61, %s2128_s11 }
 0x1ae   : > { %1586 = vrot.lane.b32.xlu0 %v1431_v58, %s2135_s5  ;;  %1390 = vrot.lane.b32.xlu1 %v1431_v58, %s2136_s6 }
 0x1af   : > { %1191 = vrot.lane.b32.xlu2 %v1134_v61, %s2137_s7 }
 0x1b6   : > { %1537 = vrot.lane.b32.xlu1 %v1431_v58, %s2138_s9  ;;  %1001 = vrot.lane.b32.xlu0 %v2433_v5, %s2125_s8 }
 0x1b7   : > { %1488 = vrot.lane.b32.xlu2 %v1431_v58, %s2139_s10 }
 0x1be   : > { %1007 = vrot.lane.b32.xlu0 %v2439_v6, %s2125_s8  ;;  %997 = vrot.lane.b32.xlu1 %v988_v7, %s2125_s8 }
 0x1bf   : > { %1635 = vrot.lane.b32.xlu2 %v1431_v58, %s2140_s17 }
 0x1c6   : > { %1046 = vrot.lane.b32.xlu0 %v988_v7, %s2128_s11  ;;  %1003 = vrot.lane.b32.xlu1 %v2445_v8, %s2125_s8 }
 0x1c7   : > { %999 = vrot.lane.b32.xlu2 %v989_v9, %s2125_s8 }
 0x1ce   : > { %1052 = vrot.lane.b32.xlu0 %v2445_v8, %s2128_s11  ;;  %1009 = vrot.lane.b32.xlu1 %v2451_v10, %s2125_s8 }
 0x1cf   : > { %1005 = vrot.lane.b32.xlu2 %v992_v11, %s2125_s8  ;;  %s2141_s8 = smov 2  }
 0x1d6   : > { %1058 = vrot.lane.b32.xlu0 %v2451_v10, %s2128_s11  ;;  %1048 = vrot.lane.b32.xlu1 %v989_v9, %s2128_s11 }
 0x1d7   : > { %1050 = vrot.lane.b32.xlu2 %v2433_v5, %s2128_s11 }
 0x1de   : > { %1097 = vrot.lane.b32.xlu0 %v989_v9, %s2132_s29  ;;  %1054 = vrot.lane.b32.xlu1 %v992_v11, %s2128_s11 }
 0x1df   : > { %1056 = vrot.lane.b32.xlu2 %v2439_v6, %s2128_s11  ;;  %s2142_s11 = smov 4  }
 0x1e6   : > { %1103 = vrot.lane.b32.xlu0 %v992_v11, %s2132_s29  ;;  %1099 = vrot.lane.b32.xlu1 %v2433_v5, %s2132_s29 }
 0x1e7   : > { %1095 = vrot.lane.b32.xlu2 %v988_v7, %s2132_s29 }
 0x1ee   : > { %1148 = vrot.lane.b32.xlu0 %v2433_v5, %s2131_s28  ;;  %1105 = vrot.lane.b32.xlu1 %v2439_v6, %s2132_s29 }
 0x1ef   : > { %1101 = vrot.lane.b32.xlu2 %v2445_v8, %s2132_s29 }
 0x1f6   : > { %1154 = vrot.lane.b32.xlu0 %v2439_v6, %s2131_s28  ;;  %1144 = vrot.lane.b32.xlu1 %v988_v7, %s2131_s28 }
 0x1f7   : > { %1107 = vrot.lane.b32.xlu2 %v2451_v10, %s2132_s29  ;;  %s1821_s29 = sshll.u32 %s2357_s27, 4  ;;  %s1822_s29 = int_to_ptr.vmem [resolvable:$true] %s1821_s29 }
 0x1f9   : > { %v996_v12 = vpop.permute.xlu2 %995 }
 0x1fa   : > { %1019 = vst.msk [vmem:[%s2357_s27 + $0x1] sm:$0x1] %vm969_vm11, %v996_v12 }
 0x1fe   : > { %1193 = vrot.lane.b32.xlu0 %v988_v7, %s2137_s7  ;;  %1150 = vrot.lane.b32.xlu1 %v2445_v8, %s2131_s28 }
 0x1ff   : > { %1146 = vrot.lane.b32.xlu2 %v989_v9, %s2131_s28 }
 0x201   : > { %v1045_v13 = vpop.permute.xlu2 %1044 }
 0x202   : > { %1068 = vst.msk [vmem:[%s2357_s27 + $0x2] sm:$0x1] %vm969_vm11, %v1045_v13 }
 0x206   : > { %1199 = vrot.lane.b32.xlu0 %v2445_v8, %s2137_s7  ;;  %1156 = vrot.lane.b32.xlu1 %v2451_v10, %s2131_s28 }
 0x207   : > { %1152 = vrot.lane.b32.xlu2 %v992_v11, %s2131_s28  ;;  %s1820_s28 = scalar_lea.hbm %s2994_s3, %s1985_s20 }
 0x209   : > { %v1192_v14 = vpop.permute.xlu2 %1191 }
 0x20a   : > { %1215 = vst.msk [vmem:[%s2357_s27 + $0x5] sm:$0x1] %vm969_vm11, %v1192_v14 }
 0x20e   : > { %1205 = vrot.lane.b32.xlu0 %v2451_v10, %s2137_s7  ;;  %1195 = vrot.lane.b32.xlu1 %v989_v9, %s2137_s7 }
 0x20f   : > { %1197 = vrot.lane.b32.xlu2 %v2433_v5, %s2137_s7 }
 0x210   : > { %v1143_v16 = vpop.permute.xlu0 %1142  ;;  %v1094_v17 = vpop.permute.xlu1 %1093 }
 0x211   : > { %1166 = vst.msk [vmem:[%s2357_s27 + $0x4] sm:$0x1] %vm969_vm11, %v1143_v16  ;;  %v1489_v20 = vpop.permute.xlu2 %1488 }
 0x212   : > { %1117 = vst.msk [vmem:[%s2357_s27 + $0x3] sm:$0x1] %vm969_vm11, %v1094_v17 }
 0x213   : > { %1512 = vst.msk [vmem:[%s2357_s27 + $0xa] sm:$0x1] %vm969_vm11, %v1489_v20 }
 0x216   : > { %1244 = vrot.lane.b32.xlu0 %v989_v9, %s2134_s4  ;;  %1201 = vrot.lane.b32.xlu1 %v992_v11, %s2137_s7 }
 0x217   : > { %1203 = vrot.lane.b32.xlu2 %v2439_v6, %s2137_s7 }
 0x218   : > { %v1440_v22 = vpop.permute.xlu0 %1439  ;;  %v1241_v23 = vpop.permute.xlu1 %1240 }
 0x219   : > { %1463 = vst.msk [vmem:[%s2357_s27 + $0x9] sm:$0x1] %vm969_vm11, %v1440_v22  ;;  %v1636_v24 = vpop.permute.xlu2 %1635 }
 0x21a   : > { %1264 = vst.msk [vmem:[%s2357_s27 + $0x6] sm:$0x1] %vm969_vm11, %v1241_v23 }
 0x21b   : > { %1659 = vst.msk [vmem:[%s2357_s27 + $0xd] sm:$0x1] %vm969_vm11, %v1636_v24 }
 0x21e   : > { %1250 = vrot.lane.b32.xlu0 %v992_v11, %s2134_s4  ;;  %1246 = vrot.lane.b32.xlu1 %v2433_v5, %s2134_s4 }
 0x21f   : > { %1242 = vrot.lane.b32.xlu2 %v988_v7, %s2134_s4 }
 0x220   : > { %v1587_v25 = vpop.permute.xlu0 %1586  ;;  %v1391_v26 = vpop.permute.xlu1 %1390 }
 0x221   : > { %1610 = vst.msk [vmem:[%s2357_s27 + $0xc] sm:$0x1] %vm969_vm11, %v1587_v25  ;;  %v1000_v19 = vpop.permute.xlu2 %999 }
 0x222   : > { %1414 = vst.msk [vmem:[%s2357_s27 + $0x8] sm:$0x1] %vm969_vm11, %v1391_v26 }
 0x223   : > { %1021 = vst.msk [vmem:[%s2357_s27 + $0x21] sm:$0x1] %vm969_vm11, %v1000_v19  ;;  %v1300_v19 = vperm.slane %v2393_v62, 0 }
 0x226   : > { %1394 = vrot.lane.b32.xlu0 %v2529_v31, %s2136_s6  ;;  %1252 = vrot.lane.b32.xlu1 %v2439_v6, %s2134_s4 }
 0x227   : > { %1248 = vrot.lane.b32.xlu2 %v2445_v8, %s2134_s4 }
 0x228   : > { %v1538_v32 = vpop.permute.xlu1 %1537  ;;  %v1002_v33 = vpop.permute.xlu0 %1001 }
 0x229   : > { %1561 = vst.msk [vmem:[%s2357_s27 + $0xb] sm:$0x1] %vm969_vm11, %v1538_v32  ;;  %v1006_v28 = vpop.permute.xlu2 %1005 }
 0x22a   : > { %1022 = vst.msk [vmem:[%s2357_s27 + $0x31] sm:$0x1] %vm969_vm11, %v1002_v33  ;;  %v1281_v33 = vrot.slane %v2398_v63, 1 }
 0x22b   : > { %1024 = vst.msk [vmem:[%s2357_s27 + $0x51] sm:$0x1] %vm969_vm11, %v1006_v28  ;;  %v1301_v28 = vperm.slane %v2393_v62, 1 }
 0x22c   : > { %v1303_v21 = vperm.slane %v1281_v33, 1 }
 0x22e   : > { %1400 = vrot.lane.b32.xlu0 %v2545_v34, %s2136_s6  ;;  %1396 = vrot.lane.b32.xlu1 %v2547_v39, %s2136_s6 }
 0x22f   : > { %1254 = vrot.lane.b32.xlu2 %v2451_v10, %s2134_s4 }
 0x230   : > { %v1008_v18 = vpop.permute.xlu0 %1007  ;;  %v998_v29 = vpop.permute.xlu1 %997 }
 0x231   : > { %1025 = vst.msk [vmem:[%s2357_s27 + $0x61] sm:$0x1] %vm969_vm11, %v1008_v18  ;;  %v1051_v40 = vpop.permute.xlu2 %1050  ;;  %v1284_v18 = vrot.slane %v2408_v1, 2 }
 0x232   : > { %1071 = vst.msk [vmem:[%s2357_s27 + $0x32] sm:$0x1] %vm969_vm11, %v1051_v40  ;;  %v1302_v40 = vperm.slane %v1281_v33, 0 }
 0x233   : > { %1020 = vst.msk [vmem:[%s2357_s27 + $0x11] sm:$0x1] %vm969_vm11, %v998_v29  ;;  %v1304_v37 = vperm.slane %v1284_v18, 0 }
 0x236   : > { %1445 = vrot.lane.b32.xlu0 %v2547_v39, %s2133_s30  ;;  %1402 = vrot.lane.b32.xlu1 %v2563_v42, %s2136_s6 }
 0x237   : > { %1392 = vrot.lane.b32.xlu2 %v2565_v36, %s2136_s6 }
 0x238   : > { %v1047_v43 = vpop.permute.xlu0 %1046  ;;  %v1004_v30 = vpop.permute.xlu1 %1003 }
 0x239   : > { %1069 = vst.msk [vmem:[%s2357_s27 + $0x12] sm:$0x1] %vm969_vm11, %v1047_v43  ;;  %v1057_v45 = vpop.permute.xlu2 %1056 }
 0x23a   : > { %1074 = vst.msk [vmem:[%s2357_s27 + $0x62] sm:$0x1] %vm969_vm11, %v1057_v45 }
 0x23b   : > { %1023 = vst.msk [vmem:[%s2357_s27 + $0x41] sm:$0x1] %vm969_vm11, %v1004_v30  ;;  %v1305_v30 = vperm.slane %v1284_v18, 1 }
 0x23e   : > { %1451 = vrot.lane.b32.xlu0 %v2563_v42, %s2133_s30  ;;  %1441 = vrot.lane.b32.xlu1 %v2565_v36, %s2133_s30 }
 0x23f   : > { %1398 = vrot.lane.b32.xlu2 %v2580_v38, %s2136_s6 }
 0x240   : > { %v1053_v46 = vpop.permute.xlu0 %1052  ;;  %v1010_v44 = vpop.permute.xlu1 %1009 }
 0x241   : > { %1072 = vst.msk [vmem:[%s2357_s27 + $0x42] sm:$0x1] %vm969_vm11, %v1053_v46  ;;  %v1096_v47 = vpop.permute.xlu2 %1095 }
 0x242   : > { %1118 = vst.msk [vmem:[%s2357_s27 + $0x13] sm:$0x1] %vm969_vm11, %v1096_v47 }
 0x243   : > { %1026 = vst.msk [vmem:[%s2357_s27 + $0x71] sm:$0x1] %vm969_vm11, %v1010_v44  ;;  %v1312_v44 = vperm.slane %v1296_v35, 0 }
 0x246   : > { %1490 = vrot.lane.b32.xlu0 %v2565_v36, %s2139_s10  ;;  %1447 = vrot.lane.b32.xlu1 %v2580_v38, %s2133_s30 }
 0x247   : > { %1404 = vrot.lane.b32.xlu2 %v2595_v48, %s2136_s6 }
 0x248   : > { %v1059_v49 = vpop.permute.xlu0 %1058  ;;  %v1049_v51 = vpop.permute.xlu1 %1048 }
 0x249   : > { %1075 = vst.msk [vmem:[%s2357_s27 + $0x72] sm:$0x1] %vm969_vm11, %v1059_v49  ;;  %v1102_v52 = vpop.permute.xlu2 %1101 }
 0x24a   : > { %1121 = vst.msk [vmem:[%s2357_s27 + $0x43] sm:$0x1] %vm969_vm11, %v1102_v52 }
 0x24b   : > { %1070 = vst.msk [vmem:[%s2357_s27 + $0x22] sm:$0x1] %vm969_vm11, %v1049_v51  ;;  %v1299_v51 = vrot.slane %v2431_v59, 7 }
 0x24e   : > { %1496 = vrot.lane.b32.xlu0 %v2580_v38, %s2139_s10  ;;  %1453 = vrot.lane.b32.xlu1 %v2595_v48, %s2133_s30 }
 0x24f   : > { %1443 = vrot.lane.b32.xlu2 %v2529_v31, %s2133_s30 }
 0x250   : > { %v1098_v53 = vpop.permute.xlu0 %1097  ;;  %v1055_v54 = vpop.permute.xlu1 %1054 }
 0x251   : > { %1119 = vst.msk [vmem:[%s2357_s27 + $0x23] sm:$0x1] %vm969_vm11, %v1098_v53  ;;  %v1108_v61 = vpop.permute.xlu2 %1107  ;;  %v2773_v53 = vrot.slane %v2766_v3, 7 }
 0x252   : > { %1124 = vst.msk [vmem:[%s2357_s27 + $0x73] sm:$0x1] %vm969_vm11, %v1108_v61  ;;  %v1313_v61 = vperm.slane %v1296_v35, 1 }
 0x253   : > { %1073 = vst.msk [vmem:[%s2357_s27 + $0x52] sm:$0x1] %vm969_vm11, %v1055_v54  ;;  %v1315_v54 = vperm.slane %v1299_v51, 1  ;;  %v1673_v59 = vsel %vm1279_vm13, %v2351_v50, %v2773_v53  ;;  %v1681_v33 = vsel %vm1291_vm3, %v2351_v50, %v2773_v53 }
 0x256   : > { %1502 = vrot.lane.b32.xlu0 %v2595_v48, %s2139_s10  ;;  %1492 = vrot.lane.b32.xlu1 %v2529_v31, %s2139_s10 }
 0x257   : > { %1449 = vrot.lane.b32.xlu2 %v2545_v34, %s2133_s30  ;;  %s1823_s30 = sshll.u32 %s1820_s28, 4  ;;  %s1824_s30 = int_to_ptr.hbm [resolvable:$true] %s1823_s30 }
 0x258   : > { %v1104_v55 = vpop.permute.xlu0 %1103  ;;  %v1100_v56 = vpop.permute.xlu1 %1099  ;;  %s2072_s4 = sshra.s32 %s1824_s30, 4  ;;  %s2073_s4 = int_to_ptr.hbm [resolvable:$true] %s2072_s4 }
 0x259   : > { %1122 = vst.msk [vmem:[%s2357_s27 + $0x53] sm:$0x1] %vm969_vm11, %v1104_v55  ;;  %v1147_v57 = vpop.permute.xlu2 %1146  ;;  %p2079_p0 = scmp.lt.s32.totalorder %s2073_s4, %s2994_s3 }
 0x25a   : > { %1168 = vst.msk [vmem:[%s2357_s27 + $0x24] sm:$0x1] %vm969_vm11, %v1147_v57 }
 0x25b   : > { %1120 = vst.msk [vmem:[%s2357_s27 + $0x33] sm:$0x1] %vm969_vm11, %v1100_v56 }
 0x25e   : > { %1541 = vrot.lane.b32.xlu0 %v2529_v31, %s2138_s9  ;;  %1498 = vrot.lane.b32.xlu1 %v2545_v34, %s2139_s10 }
 0x25f   : > { %1494 = vrot.lane.b32.xlu2 %v2547_v39, %s2139_s10 }
 0x260   : > { %v1149_v58 = vpop.permute.xlu0 %1148  ;;  %v1106_v60 = vpop.permute.xlu1 %1105 }
 0x261   : > { %1169 = vst.msk [vmem:[%s2357_s27 + $0x34] sm:$0x1] %vm969_vm11, %v1149_v58  ;;  %v1153_v5 = vpop.permute.xlu2 %1152  ;;  %v1674_v58 = vrot.slane %v1673_v59, 1  ;;  %v1765_v59 = vrot.slane %v2766_v3, 5 }
 0x262   : > { %1171 = vst.msk [vmem:[%s2357_s27 + $0x54] sm:$0x1] %vm969_vm11, %v1153_v5  ;;  %v1672_v5 = vsel %vm1277_vm12, %v2351_v50, %v2773_v53 }
 0x263   : > { %1123 = vst.msk [vmem:[%s2357_s27 + $0x63] sm:$0x1] %vm969_vm11, %v1106_v60 }
 0x266   : > { %1547 = vrot.lane.b32.xlu0 %v2545_v34, %s2138_s9  ;;  %1543 = vrot.lane.b32.xlu1 %v2547_v39, %s2138_s9 }
 0x267   : > { %1500 = vrot.lane.b32.xlu2 %v2563_v42, %s2139_s10 }
 0x268   : > { %v1155_v6 = vpop.permute.xlu0 %1154  ;;  %v1145_v7 = vpop.permute.xlu1 %1144 }
 0x269   : > { %1172 = vst.msk [vmem:[%s2357_s27 + $0x64] sm:$0x1] %vm969_vm11, %v1155_v6  ;;  %v1198_v8 = vpop.permute.xlu2 %1197  ;;  %v1689_v6 = vperm.slane %v1674_v58, 0 }
 0x26a   : > { %1218 = vst.msk [vmem:[%s2357_s27 + $0x35] sm:$0x1] %vm969_vm11, %v1198_v8  ;;  %v1314_v8 = vperm.slane %v1299_v51, 0 }
 0x26b   : > { %1167 = vst.msk [vmem:[%s2357_s27 + $0x14] sm:$0x1] %vm969_vm11, %v1145_v7  ;;  %v1687_v7 = vperm.slane %v1672_v5, 0 }
 0x26e   : > { %1592 = vrot.lane.b32.xlu0 %v2547_v39, %s2135_s5  ;;  %1549 = vrot.lane.b32.xlu1 %v2563_v42, %s2138_s9 }
 0x26f   : > { %1539 = vrot.lane.b32.xlu2 %v2565_v36, %s2138_s9 }
 0x270   : > { %v1194_v9 = vpop.permute.xlu0 %1193  ;;  %v1151_v10 = vpop.permute.xlu1 %1150 }
 0x271   : > { %1216 = vst.msk [vmem:[%s2357_s27 + $0x15] sm:$0x1] %vm969_vm11, %v1194_v9  ;;  %v1204_v11 = vpop.permute.xlu2 %1203  ;;  %v1675_v9 = vsel %vm1282_vm15, %v2351_v50, %v2773_v53 }
 0x272   : > { %1221 = vst.msk [vmem:[%s2357_s27 + $0x65] sm:$0x1] %vm969_vm11, %v1204_v11 }
 0x273   : > { %1170 = vst.msk [vmem:[%s2357_s27 + $0x44] sm:$0x1] %vm969_vm11, %v1151_v10 }
 0x276   : > { %1598 = vrot.lane.b32.xlu0 %v2563_v42, %s2135_s5  ;;  %1588 = vrot.lane.b32.xlu1 %v2565_v36, %s2135_s5 }
 0x277   : > { %1545 = vrot.lane.b32.xlu2 %v2580_v38, %s2138_s9 }
 0x278   : > { %v1200_v12 = vpop.permute.xlu0 %1199  ;;  %v1157_v13 = vpop.permute.xlu1 %1156 }
 0x279   : > { %1219 = vst.msk [vmem:[%s2357_s27 + $0x45] sm:$0x1] %vm969_vm11, %v1200_v12  ;;  %v1243_v14 = vpop.permute.xlu2 %1242  ;;  %v1676_v12 = vrot.slane %v1675_v9, 2  ;;  %v1766_v9 = vrot.slane %v2766_v3, 6 }
 0x27a   : > { %1265 = vst.msk [vmem:[%s2357_s27 + $0x16] sm:$0x1] %vm969_vm11, %v1243_v14 }
 0x27b   : > { %1173 = vst.msk [vmem:[%s2357_s27 + $0x74] sm:$0x1] %vm969_vm11, %v1157_v13  ;;  %v1692_v14 = vperm.slane %v1676_v12, 1 }
 0x27e   : > { %1637 = vrot.lane.b32.xlu0 %v2565_v36, %s2140_s17  ;;  %1594 = vrot.lane.b32.xlu1 %v2580_v38, %s2135_s5  ;;  %v1309_v36 = vperm.slane %v1290_v41, 1 }
 0x27f   : > { %1551 = vrot.lane.b32.xlu2 %v2595_v48, %s2138_s9  ;;  %s2078_s9 = scalar_lea.hbm %s2994_s3, 256 }
 0x280   : > { %v1206_v16 = vpop.permute.xlu0 %1205  ;;  %v1196_v17 = vpop.permute.xlu1 %1195 }
 0x281   : > { %1222 = vst.msk [vmem:[%s2357_s27 + $0x75] sm:$0x1] %vm969_vm11, %v1206_v16  ;;  %v1249_v20 = vpop.permute.xlu2 %1248  ;;  %v1690_v16 = vperm.slane %v1674_v58, 1  ;;  %v1775_v58 = vperm.slane %v2773_v53, 0 }
 0x282   : > { %1268 = vst.msk [vmem:[%s2357_s27 + $0x46] sm:$0x1] %vm969_vm11, %v1249_v20  ;;  %v1679_v20 = vsel %vm1288_vm0, %v2351_v50, %v2773_v53 }
 0x283   : > { %1217 = vst.msk [vmem:[%s2357_s27 + $0x25] sm:$0x1] %vm969_vm11, %v1196_v17  ;;  %v1688_v17 = vperm.slane %v1672_v5, 1 }
 0x286   : > { %1643 = vrot.lane.b32.xlu0 %v2580_v38, %s2140_s17  ;;  %1600 = vrot.lane.b32.xlu1 %v2595_v48, %s2135_s5  ;;  %v1293_v38 = vrot.slane %v2426_v4, 5 }
 0x287   : > { %1590 = vrot.lane.b32.xlu2 %v2529_v31, %s2135_s5 }
 0x288   : > { %v1245_v22 = vpop.permute.xlu0 %1244  ;;  %v1202_v23 = vpop.permute.xlu1 %1201  ;;  %v1310_v47 = vperm.slane %v1293_v38, 0  ;;  %v1311_v55 = vperm.slane %v1293_v38, 1 }
 0x289   : > { %1266 = vst.msk [vmem:[%s2357_s27 + $0x26] sm:$0x1] %vm969_vm11, %v1245_v22  ;;  %v1255_v24 = vpop.permute.xlu2 %1254  ;;  %v1677_v22 = vsel %vm1285_vm14, %v2351_v50, %v2773_v53 }
 0x28a   : > { %1271 = vst.msk [vmem:[%s2357_s27 + $0x76] sm:$0x1] %vm969_vm11, %v1255_v24 }
 0x28b   : > { %1220 = vst.msk [vmem:[%s2357_s27 + $0x55] sm:$0x1] %vm969_vm11, %v1202_v23 }
 0x28e   : > { %1649 = vrot.lane.b32.xlu0 %v2595_v48, %s2140_s17  ;;  %1639 = vrot.lane.b32.xlu1 %v2529_v31, %s2140_s17  ;;  %v1308_v48 = vperm.slane %v1290_v41, 0 }
 0x28f   : > { %1596 = vrot.lane.b32.xlu2 %v2545_v34, %s2135_s5  ;;  %s2074_s5 = scalar_lea.hbm %s2073_s4, 128 }
 0x290   : > { %v1251_v25 = vpop.permute.xlu0 %1250  ;;  %v1247_v26 = vpop.permute.xlu1 %1246  ;;  %p2075_p11 = scmp.ne.s32.totalorder %s2073_s4, %s2074_s5  ;;  %p2080_p1 = scmp.lt.s32.totalorder %s2078_s9, %s2074_s5 }
 0x291   : > { %1269 = vst.msk [vmem:[%s2357_s27 + $0x56] sm:$0x1] %vm969_vm11, %v1251_v25  ;;  %v1393_v15 = vpop.permute.xlu2 %1392  ;;  %v1680_v25 = vrot.slane %v1679_v20, 4 }
 0x292   : > { %1415 = vst.msk [vmem:[%s2357_s27 + $0x18] sm:$0x1] %vm969_vm11, %v1393_v15  ;;  %p2076_p12 = pnand %p2075_p11, %p2204_p5  ;;  %p2081_p2 = por %p2080_p1, %p2079_p0 }
 0x293   : > { %1267 = vst.msk [vmem:[%s2357_s27 + $0x36] sm:$0x1] %vm969_vm11, %v1247_v26  ;;  %v1678_v26 = vrot.slane %v1677_v22, 3 }
 0x294   : > { %p2077_p13 = pneg %p2076_p12 }
 0x295   : > { %v1694_v18 = vperm.slane %v1678_v26, 1 }
 0x296   : > { %1316 = vrot.lane.b32.xlu0 %v1300_v19, %s2141_s8  ;;  %1645 = vrot.lane.b32.xlu1 %v2545_v34, %s2140_s17  ;;  %v1695_v19 = vperm.slane %v1680_v25, 0  ;;  %p2082_p3 = pnand %p2081_p2, %p2077_p13 }
 0x297   : > { %1641 = vrot.lane.b32.xlu2 %v2547_v39, %s2140_s17  ;;  %v1287_v39 = vrot.slane %v2403_v0, 3 }
 0x298   : > { %v1395_v31 = vpop.permute.xlu0 %1394  ;;  %v1253_v32 = vpop.permute.xlu1 %1252 }
 0x299   : > { %1416 = vst.msk [vmem:[%s2357_s27 + $0x28] sm:$0x1] %vm969_vm11, %v1395_v31  ;;  %v1399_v27 = vpop.permute.xlu2 %1398  ;;  %v1306_v62 = vperm.slane %v1287_v39, 0  ;;  %v1307_v43 = vperm.slane %v1287_v39, 1  ;;  %v1693_v31 = vperm.slane %v1678_v26, 0  ;;  %v1696_v39 = vperm.slane %v1680_v25, 1 }
 0x29a   : > { %1418 = vst.msk [vmem:[%s2357_s27 + $0x48] sm:$0x1] %vm969_vm11, %v1399_v27 }
 0x29b   : > { %1270 = vst.msk [vmem:[%s2357_s27 + $0x66] sm:$0x1] %vm969_vm11, %v1253_v32  ;;  %v1691_v32 = vperm.slane %v1676_v12, 0 }
 0x29e   : > { %1322 = vrot.lane.b32.xlu0 %v1303_v21, %s2141_s8  ;;  %1318 = vrot.lane.b32.xlu1 %v1301_v28, %s2141_s8  ;;  %v1682_v28 = vrot.slane %v1681_v33, 5 }
 0x29f   : > { %1647 = vrot.lane.b32.xlu2 %v2563_v42, %s2140_s17 }
 0x2a0   : > { %v1401_v63 = vpop.permute.xlu0 %1400  ;;  %v1397_v34 = vpop.permute.xlu1 %1396 }
 0x2a1   : > { %1419 = vst.msk [vmem:[%s2357_s27 + $0x58] sm:$0x1] %vm969_vm11, %v1401_v63  ;;  %v1405_v29 = vpop.permute.xlu2 %1404 }
 0x2a2   : > { %1421 = vst.msk [vmem:[%s2357_s27 + $0x78] sm:$0x1] %vm969_vm11, %v1405_v29  ;;  %v1685_v29 = vsel %vm1297_vm4, %v2773_v53, %v2351_v50 }
 0x2a3   : > { %1417 = vst.msk [vmem:[%s2357_s27 + $0x38] sm:$0x1] %vm969_vm11, %v1397_v34  ;;  %v1698_v34 = vperm.slane %v1682_v28, 1 }
 0x2a6   : > { %1328 = vrot.lane.b32.xlu0 %v1306_v62, %s2141_s8  ;;  %1324 = vrot.lane.b32.xlu1 %v1304_v37, %s2141_s8  ;;  %v1683_v62 = vsel %vm1294_vm2, %v2351_v50, %v2773_v53  ;;  %v1774_v53 = vperm.slane %v1766_v9, 0 }
 0x2a7   : > { %1320 = vrot.lane.b32.xlu2 %v1302_v40, %s2141_s8 }
 0x2a8   : > { %v1446_v0 = vpop.permute.xlu0 %1445  ;;  %v1403_v1 = vpop.permute.xlu1 %1402 }
 0x2a9   : > { %1466 = vst.msk [vmem:[%s2357_s27 + $0x39] sm:$0x1] %vm969_vm11, %v1446_v0  ;;  %v1444_v42 = vpop.permute.xlu2 %1443  ;;  %v1686_v0 = vrot.slane %v1685_v29, 7 }
 0x2aa   : > { %1465 = vst.msk [vmem:[%s2357_s27 + $0x29] sm:$0x1] %vm969_vm11, %v1444_v42 }
 0x2ab   : > { %1420 = vst.msk [vmem:[%s2357_s27 + $0x68] sm:$0x1] %vm969_vm11, %v1403_v1  ;;  %v1684_v1 = vrot.slane %v1683_v62, 6  ;;  %v1701_v50 = vperm.slane %v1686_v0, 0  ;;  %v1702_v38 = vperm.slane %v1686_v0, 1 }
 0x2ad   : > { %v1699_v42 = vperm.slane %v1684_v1, 0 }
 0x2ae   : > { %1334 = vrot.lane.b32.xlu0 %v1309_v36, %s2141_s8  ;;  %1330 = vrot.lane.b32.xlu1 %v1307_v43, %s2141_s8  ;;  %v1697_v36 = vperm.slane %v1682_v28, 0 }
 0x2af   : > { %1326 = vrot.lane.b32.xlu2 %v1305_v30, %s2141_s8 }
 0x2b0   : > { %v1452_v45 = vpop.permute.xlu0 %1451  ;;  %v1442_v2 = vpop.permute.xlu1 %1441 }
 0x2b1   : > { %1469 = vst.msk [vmem:[%s2357_s27 + $0x69] sm:$0x1] %vm969_vm11, %v1452_v45  ;;  %v1450_v46 = vpop.permute.xlu2 %1449  ;;  %v1761_v45 = vrot.slane %v2766_v3, 1 }
 0x2b2   : > { %1468 = vst.msk [vmem:[%s2357_s27 + $0x59] sm:$0x1] %vm969_vm11, %v1450_v46  ;;  %v1700_v46 = vperm.slane %v1684_v1, 1 }
 0x2b3   : > { %1464 = vst.msk [vmem:[%s2357_s27 + $0x19] sm:$0x1] %vm969_vm11, %v1442_v2  ;;  %v1769_v35 = vperm.slane %v1761_v45, 0 }
 0x2b6   : > { %1340 = vrot.lane.b32.xlu0 %v1312_v44, %s2141_s8  ;;  %1336 = vrot.lane.b32.xlu1 %v1310_v47, %s2141_s8 }
 0x2b7   : > { %1332 = vrot.lane.b32.xlu2 %v1308_v48, %s2141_s8  ;;  %v1764_v48 = vrot.slane %v2766_v3, 4 }
 0x2b8   : > { %v1491_v4 = vpop.permute.xlu0 %1490  ;;  %v1448_v49 = vpop.permute.xlu1 %1447 }
 0x2b9   : > { %1513 = vst.msk [vmem:[%s2357_s27 + $0x1a] sm:$0x1] %vm969_vm11, %v1491_v4  ;;  %v1495_v52 = vpop.permute.xlu2 %1494  ;;  %v1762_v4 = vrot.slane %v2766_v3, 2  ;;  %v1772_v51 = vperm.slane %v1764_v48, 0 }
 0x2ba   : > { %1515 = vst.msk [vmem:[%s2357_s27 + $0x3a] sm:$0x1] %vm969_vm11, %v1495_v52 }
 0x2bb   : > { %1467 = vst.msk [vmem:[%s2357_s27 + $0x49] sm:$0x1] %vm969_vm11, %v1448_v49  ;;  %v1770_v52 = vperm.slane %v1762_v4, 0 }
 0x2be   : > { %1346 = vrot.lane.b32.xlu0 %v1315_v54, %s2141_s8  ;;  %1342 = vrot.lane.b32.xlu1 %v1313_v61, %s2141_s8  ;;  %v1768_v54 = vperm.slane %v2766_v3, 0 }
 0x2bf   : > { %1338 = vrot.lane.b32.xlu2 %v1311_v55, %s2141_s8 }
 0x2c0   : > { %v1497_v56 = vpop.permute.xlu0 %1496  ;;  %v1454_v57 = vpop.permute.xlu1 %1453 }
 0x2c1   : > { %1516 = vst.msk [vmem:[%s2357_s27 + $0x4a] sm:$0x1] %vm969_vm11, %v1497_v56  ;;  %v1501_v60 = vpop.permute.xlu2 %1500 }
 0x2c2   : > { %1518 = vst.msk [vmem:[%s2357_s27 + $0x6a] sm:$0x1] %vm969_vm11, %v1501_v60  ;;  %v1773_v60 = vperm.slane %v1765_v59, 0 }
 0x2c3   : > { %1470 = vst.msk [vmem:[%s2357_s27 + $0x79] sm:$0x1] %vm969_vm11, %v1454_v57  ;;  %v1763_v57 = vrot.slane %v2766_v3, 3 }
 0x2c5   : > { %v1771_v5 = vperm.slane %v1763_v57, 0 }
 0x2c6   : > { %1707 = vrot.lane.b32.xlu0 %v1689_v6, %s2142_s11  ;;  %1703 = vrot.lane.b32.xlu1 %v1687_v7, %s2142_s11 }
 0x2c7   : > { %1344 = vrot.lane.b32.xlu2 %v1314_v8, %s2141_s8 }
 0x2c8   : > { %v1503_v10 = vpop.permute.xlu0 %1502  ;;  %v1493_v11 = vpop.permute.xlu1 %1492 }
 0x2c9   : > { %1519 = vst.msk [vmem:[%s2357_s27 + $0x7a] sm:$0x1] %vm969_vm11, %v1503_v10  ;;  %v1540_v13 = vpop.permute.xlu2 %1539 }
 0x2ca   : > { %1562 = vst.msk [vmem:[%s2357_s27 + $0x1b] sm:$0x1] %vm969_vm11, %v1540_v13 }
 0x2cb   : > { %1514 = vst.msk [vmem:[%s2357_s27 + $0x2a] sm:$0x1] %vm969_vm11, %v1493_v11 }
 0x2ce   : > { %1713 = vrot.lane.b32.xlu0 %v1692_v14, %s2142_s11  ;;  %1709 = vrot.lane.b32.xlu1 %v1690_v16, %s2142_s11 }
 0x2cf   : > { %1705 = vrot.lane.b32.xlu2 %v1688_v17, %s2142_s11 }
 0x2d0   : > { %v1542_v23 = vpop.permute.xlu0 %1541  ;;  %v1499_v24 = vpop.permute.xlu1 %1498 }
 0x2d1   : > { %1563 = vst.msk [vmem:[%s2357_s27 + $0x2b] sm:$0x1] %vm969_vm11, %v1542_v23  ;;  %v1546_v15 = vpop.permute.xlu2 %1545 }
 0x2d2   : > { %1565 = vst.msk [vmem:[%s2357_s27 + $0x4b] sm:$0x1] %vm969_vm11, %v1546_v15 }
 0x2d3   : > { %1517 = vst.msk [vmem:[%s2357_s27 + $0x5a] sm:$0x1] %vm969_vm11, %v1499_v24 }
 0x2d6   : > { %1719 = vrot.lane.b32.xlu0 %v1695_v19, %s2142_s11  ;;  %1715 = vrot.lane.b32.xlu1 %v1693_v31, %s2142_s11 }
 0x2d7   : > { %1711 = vrot.lane.b32.xlu2 %v1691_v32, %s2142_s11 }
 0x2d8   : > { %v1548_v27 = vpop.permute.xlu0 %1547  ;;  %v1544_v21 = vpop.permute.xlu1 %1543 }
 0x2d9   : > { %1566 = vst.msk [vmem:[%s2357_s27 + $0x5b] sm:$0x1] %vm969_vm11, %v1548_v27  ;;  %v1552_v63 = vpop.permute.xlu2 %1551 }
 0x2da   : > { %1568 = vst.msk [vmem:[%s2357_s27 + $0x7b] sm:$0x1] %vm969_vm11, %v1552_v63 }
 0x2db   : > { %1564 = vst.msk [vmem:[%s2357_s27 + $0x3b] sm:$0x1] %vm969_vm11, %v1544_v21 }
 0x2de   : > { %1725 = vrot.lane.b32.xlu0 %v1698_v34, %s2142_s11  ;;  %1721 = vrot.lane.b32.xlu1 %v1696_v39, %s2142_s11 }
 0x2df   : > { %1717 = vrot.lane.b32.xlu2 %v1694_v18, %s2142_s11 }
 0x2e0   : > { %v1593_v37 = vpop.permute.xlu0 %1592  ;;  %v1550_v40 = vpop.permute.xlu1 %1549 }
 0x2e1   : > { %1613 = vst.msk [vmem:[%s2357_s27 + $0x3c] sm:$0x1] %vm969_vm11, %v1593_v37  ;;  %v1591_v41 = vpop.permute.xlu2 %1590 }
 0x2e2   : > { %1612 = vst.msk [vmem:[%s2357_s27 + $0x2c] sm:$0x1] %vm969_vm11, %v1591_v41 }
 0x2e3   : > { %1567 = vst.msk [vmem:[%s2357_s27 + $0x6b] sm:$0x1] %vm969_vm11, %v1550_v40 }
 0x2e6   : > { %1731 = vrot.lane.b32.xlu0 %v1701_v50, %s2142_s11  ;;  %1727 = vrot.lane.b32.xlu1 %v1699_v42, %s2142_s11 }
 0x2e7   : > { %1723 = vrot.lane.b32.xlu2 %v1697_v36, %s2142_s11 }
 0x2e8   : > { %v1599_v43 = vpop.permute.xlu0 %1598  ;;  %v1589_v30 = vpop.permute.xlu1 %1588 }
 0x2e9   : > { %1616 = vst.msk [vmem:[%s2357_s27 + $0x6c] sm:$0x1] %vm969_vm11, %v1599_v43  ;;  %v1597_v2 = vpop.permute.xlu2 %1596 }
 0x2ea   : > { %1615 = vst.msk [vmem:[%s2357_s27 + $0x5c] sm:$0x1] %vm969_vm11, %v1597_v2 }
 0x2eb   : > { %1611 = vst.msk [vmem:[%s2357_s27 + $0x1c] sm:$0x1] %vm969_vm11, %v1589_v30 }
 0x2ee   : > { %1778 = vrot.lane.b32.xlu0 %v1769_v35, %s2143_s19  ;;  %1733 = vrot.lane.b32.xlu1 %v1702_v38, %s2142_s11 }
 0x2ef   : > { %1729 = vrot.lane.b32.xlu2 %v1700_v46, %s2142_s11 }
 0x2f0   : > { %v1638_v44 = vpop.permute.xlu0 %1637  ;;  %v1595_v47 = vpop.permute.xlu1 %1594 }
 0x2f1   : > { %1660 = vst.msk [vmem:[%s2357_s27 + $0x1d] sm:$0x1] %vm969_vm11, %v1638_v44  ;;  %v1642_v49 = vpop.permute.xlu2 %1641 }
 0x2f2   : > { %1662 = vst.msk [vmem:[%s2357_s27 + $0x3d] sm:$0x1] %vm969_vm11, %v1642_v49 }
 0x2f3   : > { %1614 = vst.msk [vmem:[%s2357_s27 + $0x4c] sm:$0x1] %vm969_vm11, %v1595_v47 }
 0x2f6   : > { %1784 = vrot.lane.b32.xlu0 %v1772_v51, %s2143_s19  ;;  %1780 = vrot.lane.b32.xlu1 %v1770_v52, %s2143_s19 }
 0x2f7   : > { %1776 = vrot.lane.b32.xlu2 %v1768_v54, %s2143_s19 }
 0x2f8   : > { %v1644_v61 = vpop.permute.xlu0 %1643  ;;  %v1601_v55 = vpop.permute.xlu1 %1600 }
 0x2f9   : > { %1663 = vst.msk [vmem:[%s2357_s27 + $0x4d] sm:$0x1] %vm969_vm11, %v1644_v61  ;;  %v1648_v56 = vpop.permute.xlu2 %1647 }
 0x2fa   : > { %1665 = vst.msk [vmem:[%s2357_s27 + $0x6d] sm:$0x1] %vm969_vm11, %v1648_v56 }
 0x2fb   : > { %1617 = vst.msk [vmem:[%s2357_s27 + $0x7c] sm:$0x1] %vm969_vm11, %v1601_v55 }
 0x2fe   : > { %1790 = vrot.lane.b32.xlu0 %v1775_v58, %s2143_s19  ;;  %1786 = vrot.lane.b32.xlu1 %v1773_v60, %s2143_s19 }
 0x2ff   : > { %1782 = vrot.lane.b32.xlu2 %v1771_v5, %s2143_s19 }
 0x300   : > { %v1650_v6 = vpop.permute.xlu0 %1649  ;;  %v1640_v7 = vpop.permute.xlu1 %1639 }
 0x301   : > { %1666 = vst.msk [vmem:[%s2357_s27 + $0x7d] sm:$0x1] %vm969_vm11, %v1650_v6  ;;  %v1321_v8 = vpop.permute.xlu2 %1320 }
 0x302   : > { %1661 = vst.msk [vmem:[%s2357_s27 + $0x2d] sm:$0x1] %vm969_vm11, %v1640_v7 }
 0x307   : > { %1788 = vrot.lane.b32.xlu2 %v1774_v53, %s2143_s19 }
 0x308   : > { %v1317_v10 = vpop.permute.xlu0 %1316  ;;  %v1646_v11 = vpop.permute.xlu1 %1645 }
 0x309   : > { %v1327_v12 = vpop.permute.xlu2 %1326  ;;  %1664 = vst.msk [vmem:[%s2357_s27 + $0x5d] sm:$0x1] %vm969_vm11, %v1646_v11 }
 0x310   : > { %v1323_v13 = vpop.permute.xlu0 %1322  ;;  %v1319_v14 = vpop.permute.xlu1 %1318 }
 0x311   : > { %v1350_v16 = vsel %vm1348_vm5, %v1321_v8, %v1323_v13  ;;  %v1333_v17 = vpop.permute.xlu2 %1332  ;;  %v1349_v3 = vsel %vm1348_vm5, %v1317_v10, %v1319_v14 }
 0x312   : > { %1366 = vst.msk [vmem:[%s2357_s27 + $0x17] sm:$0x1] %vm969_vm11, %v1350_v16 }
 0x313   : > { %1365 = vst.msk [vmem:[%s2357_s27 + $0x7] sm:$0x1] %vm969_vm11, %v1349_v3 }
 0x318   : > { %v1329_v20 = vpop.permute.xlu0 %1328  ;;  %v1325_v22 = vpop.permute.xlu1 %1324 }
 0x319   : > { %v1339_v23 = vpop.permute.xlu2 %1338  ;;  %v1351_v24 = vsel %vm1348_vm5, %v1325_v22, %v1327_v12 }
 0x31a   : > { %1367 = vst.msk [vmem:[%s2357_s27 + $0x27] sm:$0x1] %vm969_vm11, %v1351_v24 }
 0x320   : > { %v1335_v25 = vpop.permute.xlu0 %1334  ;;  %v1331_v26 = vpop.permute.xlu1 %1330 }
 0x321   : > { %v1353_v15 = vsel %vm1348_vm5, %v1333_v17, %v1335_v25  ;;  %v1345_v19 = vpop.permute.xlu2 %1344  ;;  %v1352_v31 = vsel %vm1348_vm5, %v1329_v20, %v1331_v26 }
 0x322   : > { %1369 = vst.msk [vmem:[%s2357_s27 + $0x47] sm:$0x1] %vm969_vm11, %v1353_v15 }
 0x323   : > { %1368 = vst.msk [vmem:[%s2357_s27 + $0x37] sm:$0x1] %vm969_vm11, %v1352_v31 }
 0x328   : > { %v1341_v32 = vpop.permute.xlu0 %1340  ;;  %v1337_v33 = vpop.permute.xlu1 %1336 }
 0x329   : > { %v1706_v27 = vpop.permute.xlu2 %1705  ;;  %v1354_v21 = vsel %vm1348_vm5, %v1337_v33, %v1339_v23 }
 0x32a   : > { %1370 = vst.msk [vmem:[%s2357_s27 + $0x57] sm:$0x1] %vm969_vm11, %v1354_v21 }
 0x330   : > { %v1347_v28 = vpop.permute.xlu0 %1346  ;;  %v1343_v63 = vpop.permute.xlu1 %1342 }
 0x331   : > { %v1356_v34 = vsel %vm1348_vm5, %v1345_v19, %v1347_v28  ;;  %v1712_v39 = vpop.permute.xlu2 %1711  ;;  %v1355_v18 = vsel %vm1348_vm5, %v1341_v32, %v1343_v63 }
 0x332   : > { %1372 = vst.msk [vmem:[%s2357_s27 + $0x77] sm:$0x1] %vm969_vm11, %v1356_v34 }
 0x333   : > { %1371 = vst.msk [vmem:[%s2357_s27 + $0x67] sm:$0x1] %vm969_vm11, %v1355_v18 }
 0x338   : > { %v1708_v29 = vpop.permute.xlu0 %1707  ;;  %v1704_v62 = vpop.permute.xlu1 %1703 }
 0x339   : > { %v1718_v37 = vpop.permute.xlu2 %1717  ;;  %v1735_v40 = vsel %vm198_vm1, %v1704_v62, %v1706_v27 }
 0x33a   : > { %1751 = vst.msk [vmem:[%s2357_s27 + $0xe] sm:$0x1] %vm969_vm11, %v1735_v40 }
 0x340   : > { %v1714_v0 = vpop.permute.xlu0 %1713  ;;  %v1710_v1 = vpop.permute.xlu1 %1709 }
 0x341   : > { %v1737_v41 = vsel %vm198_vm1, %v1712_v39, %v1714_v0  ;;  %v1724_v50 = vpop.permute.xlu2 %1723  ;;  %v1736_v42 = vsel %vm198_vm1, %v1708_v29, %v1710_v1 }
 0x342   : > { %1753 = vst.msk [vmem:[%s2357_s27 + $0x2e] sm:$0x1] %vm969_vm11, %v1737_v41 }
 0x343   : > { %1752 = vst.msk [vmem:[%s2357_s27 + $0x1e] sm:$0x1] %vm969_vm11, %v1736_v42 }
 0x348   : > { %v1720_v36 = vpop.permute.xlu0 %1719  ;;  %v1716_v43 = vpop.permute.xlu1 %1715 }
 0x349   : > { %v1730_v30 = vpop.permute.xlu2 %1729  ;;  %v1738_v45 = vsel %vm198_vm1, %v1716_v43, %v1718_v37 }
 0x34a   : > { %1754 = vst.msk [vmem:[%s2357_s27 + $0x3e] sm:$0x1] %vm969_vm11, %v1738_v45 }
 0x350   : > { %v1726_v2 = vpop.permute.xlu0 %1725  ;;  %v1722_v35 = vpop.permute.xlu1 %1721 }
 0x351   : > { %v1740_v38 = vsel %vm198_vm1, %v1724_v50, %v1726_v2  ;;  %v1777_v46 = vpop.permute.xlu2 %1776  ;;  %v1739_v44 = vsel %vm198_vm1, %v1720_v36, %v1722_v35 }
 0x352   : > { %1756 = vst.msk [vmem:[%s2357_s27 + $0x5e] sm:$0x1] %vm969_vm11, %v1740_v38 }
 0x353   : > { %1800 = vst.msk [vmem:[%s2357_s27 + $0xf] sm:$0x1] %vm969_vm11, %v1777_v46 }
 0x354   : > { %1755 = vst.msk [vmem:[%s2357_s27 + $0x4e] sm:$0x1] %vm969_vm11, %v1739_v44 }
 0x358   : > { %v1732_v47 = vpop.permute.xlu0 %1731  ;;  %v1728_v48 = vpop.permute.xlu1 %1727 }
 0x359   : > { %v1783_v4 = vpop.permute.xlu2 %1782  ;;  %v1741_v49 = vsel %vm198_vm1, %v1728_v48, %v1730_v30 }
 0x35a   : > { %1803 = vst.msk [vmem:[%s2357_s27 + $0x3f] sm:$0x1] %vm969_vm11, %v1783_v4 }
 0x35b   : > { %1757 = vst.msk [vmem:[%s2357_s27 + $0x6e] sm:$0x1] %vm969_vm11, %v1741_v49 }
 0x360   : > { %v1779_v51 = vpop.permute.xlu0 %1778  ;;  %v1734_v52 = vpop.permute.xlu1 %1733 }
 0x361   : > { %1801 = vst.msk [vmem:[%s2357_s27 + $0x1f] sm:$0x1] %vm969_vm11, %v1779_v51  ;;  %v1789_v54 = vpop.permute.xlu2 %1788  ;;  %v1742_v61 = vsel %vm198_vm1, %v1732_v47, %v1734_v52 }
 0x362   : > { %1806 = vst.msk [vmem:[%s2357_s27 + $0x6f] sm:$0x1] %vm969_vm11, %v1789_v54 }
 0x363   : > { %1758 = vst.msk [vmem:[%s2357_s27 + $0x7e] sm:$0x1] %vm969_vm11, %v1742_v61 }
 0x368   : > { %v1785_v55 = vpop.permute.xlu0 %1784  ;;  %v1781_v59 = vpop.permute.xlu1 %1780 }
 0x369   : > { %1804 = vst.msk [vmem:[%s2357_s27 + $0x4f] sm:$0x1] %vm969_vm11, %v1785_v55 }
 0x36a   : > { %1802 = vst.msk [vmem:[%s2357_s27 + $0x2f] sm:$0x1] %vm969_vm11, %v1781_v59 }
 0x370   : > { %v1791_v56 = vpop.permute.xlu0 %1790  ;;  %v1787_v57 = vpop.permute.xlu1 %1786 }
 0x371   : > { %1807 = vst.msk [vmem:[%s2357_s27 + $0x7f] sm:$0x1] %vm969_vm11, %v1791_v56 }
 0x372   : > { %1805 = vst.msk [vmem:[%s2357_s27 + $0x5f] sm:$0x1] %vm969_vm11, %v1787_v57 }
 0x373   : > { %2085 = shalt.err (!%p2082_p3)
}
 0x374   : > { %s2144_s25 = smov 128   ;;  %s2145_s27 = smov 8  }
 0x375   : > { %1987 = dma.vmem_to_hbm [thread:$0]  (%p2204_p5), %s1822_s29, 2048, %s1824_s30, %s1809_s16, %s2144_s25, %s2144_s25, %s2145_s27  }
 0x376 PF: > { %p1993_p4 = scmp.ge.s32.totalorder %s2120_s15, 2  ;;  %s1838_s8 = sand.u32 1, %s2108_s12  }
 0x377   : > { %s1839_s11 = scalar_lea.sflag [#allocation4], %s1838_s8 }
 0x378   : > { %p1990_p7 = pnand %p1993_p4, %p2208_p6 }
 0x37a   : > { %p1991_p8 = pneg %p1990_p7 }
 0x37c   : > { %2103 = dma.done.wait (%p1991_p8), %s1839_s11, 2048  }
 0x37d   : > { %2105 = vsyncadd (%p1991_p8), %s1839_s11, 4294965248  ;;  %p13_p9 = scmp.ge.s32.totalorder %s2191_s18, 4   ;;  %s2997_s12 = smov %s2112_s13 }
 0x37e   : > { %s2998_s13 = smov %s2116_s14  ;;  %s2999_s14 = smov %s2202_s21 }
 0x37f   : > { %s3000_s15 = smov %s2191_s18  ;;  %15 = sbr.rel (!%p13_p9) target bundleno = 3 (0x3), region = 75 }
 0x384   :  { %1845 = vsyncpa [#allocation4], 1 }
 0x385   :  { %1847 = vsyncpa [#allocation4 + $0x1], 1 }

</bundles_post_ra>
